<compile_context>
chip_gen: v6e
topology: v6e:2x2x1
jax: 0.10.0
libtpu: 0.0.40
codegen_flags: <defaults>
</compile_context>

<pallas_src>
import functools

import jax
import jax.numpy as jnp
from jax import lax
from jax.experimental import pallas as pl
from jax.experimental.pallas import tpu as pltpu


# ----------------------------- Pallas kernel -------------------------------

def bigru_sum_kernel(x_ref, wih_ref, bgi_ref, whh_ref, bhn_ref, out_ref,
                     *, seq_len, hidden):
    """Fused bidirectional GRU + sum over time.

    x_ref   : (T*Bp, F)  row t*Bp+b = x[t, b]   (batch padded to Bp=8)
    wih_ref : (F, 3*HP)  input weights, both directions / gates, lane-padded
    bgi_ref : (1, 3*HP)  b_ih (all gates) + b_hh (r, z gates only), packed
    whh_ref : (HP, 3*HP) block-diagonal recurrent weights, both directions
    bhn_ref : (1, HP)    b_hn for [fwd | bwd | pad] (multiplied by r in-cell)
    out_ref : (Bp, HP)   sum_t [h_fwd_t | h_bwd_t | 0-pad]

    Packed gate column order (each block HP=128 wide): [r | z | n], and within
    each block the lanes are [fwd(H) | bwd(H) | zero-pad].  Hidden layout is
    h = [h_fwd | h_bwd | zero-pad]  (Bp, HP).
    """
    T = seq_len
    H = hidden
    Bp, HP = out_ref.shape                 # Bp = 8, HP = 128
    G = wih_ref.shape[1]                   # 3 * HP
    RZ = 2 * HP                            # width of the fused r|z block

    # ---- Input projection, hoisted out of the recurrence: ONE MXU matmul for
    #      the whole sequence, both directions, all gates, biases folded in.
    gi_all = (jnp.dot(x_ref[...], wih_ref[...],
                      preferred_element_type=jnp.float32)
              + bgi_ref[...])                               # (T*Bp, G)

    whh = whh_ref[...]                                      # loop-invariant
    bhn = jnp.broadcast_to(bhn_ref[...], (Bp, HP))          # hoisted broadcast

    # Forward gate lanes take gi from step t, backward lanes from step T-1-t.
    # Within each 128-lane gate block: lanes [0,H) fwd, [H,2H) bwd, rest pad.
    col = lax.broadcasted_iota(jnp.int32, (1, G), 1)
    fwd_mask = (col & (HP - 1)) < H                         # (1, G) bool

    h = jnp.zeros((Bp, HP), jnp.float32)                    # [h_fwd | h_bwd | 0]
    acc = jnp.zeros((Bp, HP), jnp.float32)

    # Full unroll: T is small and static, scheduler sees all iterations and can
    # overlap gate math with the single recurrent matmul per step.
    for t in range(T):
        gi_f = gi_all[t * Bp:(t + 1) * Bp, :]               # x[t]      (aligned)
        gi_b = gi_all[(T - 1 - t) * Bp:(T - t) * Bp, :]     # x[T-1-t]  (aligned)
        gi = jnp.where(fwd_mask, gi_f, gi_b)                # (Bp, G)
        # One MXU issue per step: both directions via block-diagonal Whh.
        gh = jnp.dot(h, whh, preferred_element_type=jnp.float32)   # (Bp, G)
        # r and z share the sigmoid -> one activation on the 2*HP-wide block.
        rz = jax.nn.sigmoid(gi[:, :RZ] + gh[:, :RZ])
        r = rz[:, :HP]
        z = rz[:, HP:]
        # PyTorch GRU: n = tanh(W_in x + b_in + r * (W_hn h + b_hn))
        n = jnp.tanh(gi[:, RZ:] + r * (gh[:, RZ:] + bhn))
        h = (1.0 - z) * n + z * h
        acc = acc + h

    # acc is already laid out as [sum h_fwd | sum h_bwd | 0]; lane-dense store.
    out_ref[...] = acc


# ------------------------------- Wrapper ------------------------------------

@functools.partial(jax.jit, static_argnames=("hidden",))
def graphsage_bigru_forward(x, adj, packed, *, hidden):
    """x: (T, B, F) float32. adj is unused (kept for API parity). -> (B, 2H)."""
    del adj  # unused by the reference forward pass
    T, B, F = x.shape
    HP = packed["whh"].shape[0]            # padded hidden-pair width (128)

    # Pad batch to the f32 sublane tile so all per-step slices are tile-aligned.
    Bp = ((B + 7) // 8) * 8
    if Bp != B:
        x = jnp.pad(x, ((0, 0), (0, Bp - B), (0, 0)))
    x_flat = x.reshape(T * Bp, F)

    kernel = functools.partial(bigru_sum_kernel, seq_len=T, hidden=hidden)
    args = (x_flat, packed["wih"], packed["bgi"], packed["whh"], packed["bhn"])

    def full_spec(shape):
        nd = len(shape)
        return pl.BlockSpec(shape, lambda i, _nd=nd: (0,) * _nd)

    out = pl.pallas_call(
        kernel,
        out_shape=jax.ShapeDtypeStruct((Bp, HP), jnp.float32),
        grid=(1,),
        in_specs=[full_spec(a.shape) for a in args],
        out_specs=pl.BlockSpec((Bp, HP), lambda i: (0, 0)),
        compiler_params=pltpu.CompilerParams(
            dimension_semantics=("arbitrary",)),
    )(*args)

    return out[:B, :2 * hidden]


# --------------------- Parameter init & fused packing -----------------------

def init_params(key, in_features, hidden):
    """Raw per-direction, per-gate weights (gate order r, z, n):
       wih: (3, F, H), whh: (3, H, H), bih/bhh: (3, 1, H)."""
    bound = float(hidden) ** -0.5
    ks = jax.random.split(key, 8)

    def u(k_, shape):
        return jax.random.uniform(k_, shape, jnp.float32, minval=-bound, maxval=bound)

    return {
        "wih_f": u(ks[0], (3, in_features, hidden)),
        "whh_f": u(ks[1], (3, hidden, hidden)),
        "bih_f": u(ks[2], (3, 1, hidden)),
        "bhh_f": u(ks[3], (3, 1, hidden)),
        "wih_b": u(ks[4], (3, in_features, hidden)),
        "whh_b": u(ks[5], (3, hidden, hidden)),
        "bih_b": u(ks[6], (3, 1, hidden)),
        "bhh_b": u(ks[7], (3, 1, hidden)),
    }


def pack_params(params, *, lane_pad=128):
    """Repack raw per-gate params into the fused, lane-padded kernel layout.

    Gate blocks (each HP = lane_pad wide): [r | z | n]; inside each block the
    lanes are [fwd(H) | bwd(H) | zeros].  Off-diagonal direction blocks and all
    pad lanes are exactly zero, so directions cannot contaminate each other and
    padded hidden lanes stay zero through the recurrence.
    """
    F, H = params["wih_f"].shape[1], params["wih_f"].shape[2]
    HP = max(lane_pad, 2 * H)
    assert HP & (HP - 1) == 0, "padded hidden width must be a power of two"
    G = 3 * HP

    wih = jnp.zeros((F, G), jnp.float32)
    whh = jnp.zeros((HP, G), jnp.float32)   # rows [0:H] h_fwd, [H:2H] h_bwd
    bgi = jnp.zeros((1, G), jnp.float32)
    bhn = jnp.zeros((1, HP), jnp.float32)
    for g in range(3):                      # g: 0=r, 1=z, 2=n
        c = g * HP
        wih = wih.at[:, c:c + H].set(params["wih_f"][g])
        wih = wih.at[:, c + H:c + 2 * H].set(params["wih_b"][g])
        whh = whh.at[:H, c:c + H].set(params["whh_f"][g])
        whh = whh.at[H:2 * H, c + H:c + 2 * H].set(params["whh_b"][g])
        # Fold b_ih (all gates) and b_hh (r, z only) into the precomputed table;
        # b_hn stays separate because it is multiplied by r inside the cell.
        bf = params["bih_f"][g] + (params["bhh_f"][g] if g < 2 else 0.0)
        bb = params["bih_b"][g] + (params["bhh_b"][g] if g < 2 else 0.0)
        bgi = bgi.at[:, c:c + H].set(bf)
        bgi = bgi.at[:, c + H:c + 2 * H].set(bb)
    bhn = bhn.at[:, :H].set(params["bhh_f"][2])
    bhn = bhn.at[:, H:2 * H].set(params["bhh_b"][2])
    return {"wih": wih, "whh": whh, "bgi": bgi, "bhn": bhn}


# --------------------------- Pure-JAX reference ------------------------------

def ref_forward(x, params):
    T, B, F = x.shape
    H = params["wih_f"].shape[-1]

    def cell(x_t, h, wih, whh, bih, bhh):
        gi = lambda g: x_t @ wih[g] + bih[g]
        gh = lambda g: h @ whh[g] + bhh[g]
        r = jax.nn.sigmoid(gi(0) + gh(0))
        z = jax.nn.sigmoid(gi(1) + gh(1))
        n = jnp.tanh(gi(2) + r * gh(2))
        return (1.0 - z) * n + z * h

    def run(xs, wih, whh, bih, bhh):
        def f(h, x_t):
            h = cell(x_t, h, wih, whh, bih, bhh)
            return h, h
        _, hs = lax.scan(f, jnp.zeros((B, H), jnp.float32), xs)
        return hs

    hs_f = run(x, params["wih_f"], params["whh_f"], params["bih_f"], params["bhh_f"])
    hs_b = run(x[::-1], params["wih_b"], params["whh_b"], params["bih_b"], params["bhh_b"])[::-1]
    h = jnp.concatenate([hs_f, hs_b], axis=-1)   # (T, B, 2H)
    return jnp.sum(h, axis=0)                    # (B, 2H)


# --------------------------------- Main --------------------------------------

if __name__ == "__main__":
    T, B, F, H = 8, 4, 16, 32   # seq_len, batch, in_features, out_features(hidden)

    key = jax.random.PRNGKey(0)
    kx, kadj, kp = jax.random.split(key, 3)
    x = jax.random.normal(kx, (T, B, F), dtype=jnp.float32)
    adj = jax.random.normal(kadj, (B, B), dtype=jnp.float32)  # unused, API parity
    params = init_params(kp, F, H)
    packed = pack_params(params)

    out = graphsage_bigru_forward(x, adj, packed, hidden=H)
    out = jax.block_until_ready(out)

    ref = ref_forward(x, params)
    assert out.shape == (B, 2 * H), out.shape
    assert jnp.allclose(out, ref, rtol=1e-4, atol=1e-4), float(jnp.abs(out - ref).max())

    print("KERNEL_OK")
</pallas_src>

<mosaic_0001>
module attributes {stable_mosaic.version = 11 : i64} {
  func.func @bigru_sum_kernel(%arg0: i32, %arg1: memref<64x16xf32, #tpu.memory_space<vmem>>, %arg2: memref<16x384xf32, #tpu.memory_space<vmem>>, %arg3: memref<1x384xf32, #tpu.memory_space<vmem>>, %arg4: memref<128x384xf32, #tpu.memory_space<vmem>>, %arg5: memref<1x128xf32, #tpu.memory_space<vmem>>, %arg6: memref<8x128xf32, #tpu.memory_space<vmem>>) attributes {dimension_semantics = [#tpu.dimension_semantics<arbitrary>], iteration_bounds = array<i64: 1>, scalar_prefetch = 0 : i64, scratch_operands = 0 : i64, tpu.core_type = #tpu.core_type<tc>, window_params = [{pipeline_mode = #tpu.pipeline_mode<synchronous>, transform_indices = @transform_0, window_bounds = array<i64: 64, 16>}, {pipeline_mode = #tpu.pipeline_mode<synchronous>, transform_indices = @transform_1, window_bounds = array<i64: 16, 384>}, {pipeline_mode = #tpu.pipeline_mode<synchronous>, transform_indices = @transform_2, window_bounds = array<i64: 1, 384>}, {pipeline_mode = #tpu.pipeline_mode<synchronous>, transform_indices = @transform_3, window_bounds = array<i64: 128, 384>}, {pipeline_mode = #tpu.pipeline_mode<synchronous>, transform_indices = @transform_4, window_bounds = array<i64: 1, 128>}, {pipeline_mode = #tpu.pipeline_mode<synchronous>, transform_indices = @transform_5, window_bounds = array<i64: 8, 128>}]} {
    %c0 = arith.constant 0 : index
    %c0_0 = arith.constant 0 : index
    %0 = vector.load %arg1[%c0, %c0_0] : memref<64x16xf32, #tpu.memory_space<vmem>>, vector<64x16xf32>
    %c0_1 = arith.constant 0 : index
    %c0_2 = arith.constant 0 : index
    %1 = vector.load %arg2[%c0_1, %c0_2] : memref<16x384xf32, #tpu.memory_space<vmem>>, vector<16x384xf32>
    %cst = arith.constant dense<0.000000e+00> : vector<64x384xf32>
    %2 = tpu.matmul %0, %1, %cst {dimension_numbers = #tpu.dot_dimension_numbers<[1], [0], [0], [1], [0, 0, 1, 1], [], []>} : vector<64x16xf32>, vector<16x384xf32>, vector<64x384xf32> -> vector<64x384xf32>
    %c0_3 = arith.constant 0 : index
    %c0_4 = arith.constant 0 : index
    %3 = vector.load %arg3[%c0_3, %c0_4] : memref<1x384xf32, #tpu.memory_space<vmem>>, vector<1x384xf32>
    %4 = vector.broadcast %3 : vector<1x384xf32> to vector<64x384xf32>
    %5 = arith.addf %2, %4 : vector<64x384xf32>
    %c0_5 = arith.constant 0 : index
    %c0_6 = arith.constant 0 : index
    %6 = vector.load %arg4[%c0_5, %c0_6] : memref<128x384xf32, #tpu.memory_space<vmem>>, vector<128x384xf32>
    %c0_7 = arith.constant 0 : index
    %c0_8 = arith.constant 0 : index
    %7 = vector.load %arg5[%c0_7, %c0_8] : memref<1x128xf32, #tpu.memory_space<vmem>>, vector<1x128xf32>
    %8 = vector.shape_cast %7 : vector<1x128xf32> to vector<1x128xf32>
    %9 = vector.broadcast %8 : vector<1x128xf32> to vector<8x128xf32>
    %10 = tpu.iota {dimensions = array<i32: 1>} : vector<1x384xi32>
    %c127_i32 = arith.constant 127 : i32
    %11 = vector.broadcast %c127_i32 : i32 to vector<1x384xi32>
    %12 = arith.andi %10, %11 : vector<1x384xi32>
    %c32_i32 = arith.constant 32 : i32
    %13 = vector.broadcast %c32_i32 : i32 to vector<1x384xi32>
    %14 = arith.cmpi slt, %12, %13 : vector<1x384xi32>
    %cst_9 = arith.constant 0.000000e+00 : f32
    %15 = vector.broadcast %cst_9 : f32 to vector<8x128xf32>
    %cst_10 = arith.constant 0.000000e+00 : f32
    %16 = vector.broadcast %cst_10 : f32 to vector<8x128xf32>
    %17 = vector.extract_strided_slice %5 {offsets = [0, 0], sizes = [8, 384], strides = [1, 1]} : vector<64x384xf32> to vector<8x384xf32>
    %18 = vector.extract_strided_slice %5 {offsets = [56, 0], sizes = [8, 384], strides = [1, 1]} : vector<64x384xf32> to vector<8x384xf32>
    %19 = vector.shape_cast %14 : vector<1x384xi1> to vector<1x384xi1>
    %20 = vector.broadcast %19 : vector<1x384xi1> to vector<8x384xi1>
    %21 = arith.select %20, %17, %18 : vector<8x384xi1>, vector<8x384xf32>
    %cst_11 = arith.constant dense<0.000000e+00> : vector<8x384xf32>
    %22 = tpu.matmul %15, %6, %cst_11 {dimension_numbers = #tpu.dot_dimension_numbers<[1], [0], [0], [1], [0, 0, 1, 1], [], []>} : vector<8x128xf32>, vector<128x384xf32>, vector<8x384xf32> -> vector<8x384xf32>
    %23 = vector.extract_strided_slice %21 {offsets = [0, 0], sizes = [8, 256], strides = [1, 1]} : vector<8x384xf32> to vector<8x256xf32>
    %24 = vector.extract_strided_slice %22 {offsets = [0, 0], sizes = [8, 256], strides = [1, 1]} : vector<8x384xf32> to vector<8x256xf32>
    %25 = arith.addf %23, %24 : vector<8x256xf32>
    %26 = arith.negf %25 : vector<8x256xf32>
    %27 = math.exp %26 : vector<8x256xf32>
    %cst_12 = arith.constant 1.000000e+00 : f32
    %28 = vector.broadcast %cst_12 : f32 to vector<8x256xf32>
    %29 = arith.addf %28, %27 : vector<8x256xf32>
    %30 = arith.divf %28, %29 : vector<8x256xf32>
    %31 = vector.extract_strided_slice %30 {offsets = [0, 0], sizes = [8, 128], strides = [1, 1]} : vector<8x256xf32> to vector<8x128xf32>
    %32 = vector.extract_strided_slice %30 {offsets = [0, 128], sizes = [8, 128], strides = [1, 1]} : vector<8x256xf32> to vector<8x128xf32>
    %33 = vector.extract_strided_slice %21 {offsets = [0, 256], sizes = [8, 128], strides = [1, 1]} : vector<8x384xf32> to vector<8x128xf32>
    %34 = vector.extract_strided_slice %22 {offsets = [0, 256], sizes = [8, 128], strides = [1, 1]} : vector<8x384xf32> to vector<8x128xf32>
    %35 = arith.addf %34, %9 : vector<8x128xf32>
    %36 = arith.mulf %31, %35 : vector<8x128xf32>
    %37 = arith.addf %33, %36 : vector<8x128xf32>
    %38 = math.tanh %37 : vector<8x128xf32>
    %cst_13 = arith.constant 1.000000e+00 : f32
    %39 = vector.broadcast %cst_13 : f32 to vector<8x128xf32>
    %40 = arith.subf %39, %32 : vector<8x128xf32>
    %41 = arith.mulf %40, %38 : vector<8x128xf32>
    %42 = arith.mulf %32, %15 : vector<8x128xf32>
    %43 = arith.addf %41, %42 : vector<8x128xf32>
    %44 = arith.addf %16, %43 : vector<8x128xf32>
    %45 = vector.extract_strided_slice %5 {offsets = [8, 0], sizes = [8, 384], strides = [1, 1]} : vector<64x384xf32> to vector<8x384xf32>
    %46 = vector.extract_strided_slice %5 {offsets = [48, 0], sizes = [8, 384], strides = [1, 1]} : vector<64x384xf32> to vector<8x384xf32>
    %47 = vector.shape_cast %14 : vector<1x384xi1> to vector<1x384xi1>
    %48 = vector.broadcast %47 : vector<1x384xi1> to vector<8x384xi1>
    %49 = arith.select %48, %45, %46 : vector<8x384xi1>, vector<8x384xf32>
    %cst_14 = arith.constant dense<0.000000e+00> : vector<8x384xf32>
    %50 = tpu.matmul %43, %6, %cst_14 {dimension_numbers = #tpu.dot_dimension_numbers<[1], [0], [0], [1], [0, 0, 1, 1], [], []>} : vector<8x128xf32>, vector<128x384xf32>, vector<8x384xf32> -> vector<8x384xf32>
    %51 = vector.extract_strided_slice %49 {offsets = [0, 0], sizes = [8, 256], strides = [1, 1]} : vector<8x384xf32> to vector<8x256xf32>
    %52 = vector.extract_strided_slice %50 {offsets = [0, 0], sizes = [8, 256], strides = [1, 1]} : vector<8x384xf32> to vector<8x256xf32>
    %53 = arith.addf %51, %52 : vector<8x256xf32>
    %54 = arith.negf %53 : vector<8x256xf32>
    %55 = math.exp %54 : vector<8x256xf32>
    %cst_15 = arith.constant 1.000000e+00 : f32
    %56 = vector.broadcast %cst_15 : f32 to vector<8x256xf32>
    %57 = arith.addf %56, %55 : vector<8x256xf32>
    %58 = arith.divf %56, %57 : vector<8x256xf32>
    %59 = vector.extract_strided_slice %58 {offsets = [0, 0], sizes = [8, 128], strides = [1, 1]} : vector<8x256xf32> to vector<8x128xf32>
    %60 = vector.extract_strided_slice %58 {offsets = [0, 128], sizes = [8, 128], strides = [1, 1]} : vector<8x256xf32> to vector<8x128xf32>
    %61 = vector.extract_strided_slice %49 {offsets = [0, 256], sizes = [8, 128], strides = [1, 1]} : vector<8x384xf32> to vector<8x128xf32>
    %62 = vector.extract_strided_slice %50 {offsets = [0, 256], sizes = [8, 128], strides = [1, 1]} : vector<8x384xf32> to vector<8x128xf32>
    %63 = arith.addf %62, %9 : vector<8x128xf32>
    %64 = arith.mulf %59, %63 : vector<8x128xf32>
    %65 = arith.addf %61, %64 : vector<8x128xf32>
    %66 = math.tanh %65 : vector<8x128xf32>
    %cst_16 = arith.constant 1.000000e+00 : f32
    %67 = vector.broadcast %cst_16 : f32 to vector<8x128xf32>
    %68 = arith.subf %67, %60 : vector<8x128xf32>
    %69 = arith.mulf %68, %66 : vector<8x128xf32>
    %70 = arith.mulf %60, %43 : vector<8x128xf32>
    %71 = arith.addf %69, %70 : vector<8x128xf32>
    %72 = arith.addf %44, %71 : vector<8x128xf32>
    %73 = vector.extract_strided_slice %5 {offsets = [16, 0], sizes = [8, 384], strides = [1, 1]} : vector<64x384xf32> to vector<8x384xf32>
    %74 = vector.extract_strided_slice %5 {offsets = [40, 0], sizes = [8, 384], strides = [1, 1]} : vector<64x384xf32> to vector<8x384xf32>
    %75 = vector.shape_cast %14 : vector<1x384xi1> to vector<1x384xi1>
    %76 = vector.broadcast %75 : vector<1x384xi1> to vector<8x384xi1>
    %77 = arith.select %76, %73, %74 : vector<8x384xi1>, vector<8x384xf32>
    %cst_17 = arith.constant dense<0.000000e+00> : vector<8x384xf32>
    %78 = tpu.matmul %71, %6, %cst_17 {dimension_numbers = #tpu.dot_dimension_numbers<[1], [0], [0], [1], [0, 0, 1, 1], [], []>} : vector<8x128xf32>, vector<128x384xf32>, vector<8x384xf32> -> vector<8x384xf32>
    %79 = vector.extract_strided_slice %77 {offsets = [0, 0], sizes = [8, 256], strides = [1, 1]} : vector<8x384xf32> to vector<8x256xf32>
    %80 = vector.extract_strided_slice %78 {offsets = [0, 0], sizes = [8, 256], strides = [1, 1]} : vector<8x384xf32> to vector<8x256xf32>
    %81 = arith.addf %79, %80 : vector<8x256xf32>
    %82 = arith.negf %81 : vector<8x256xf32>
    %83 = math.exp %82 : vector<8x256xf32>
    %cst_18 = arith.constant 1.000000e+00 : f32
    %84 = vector.broadcast %cst_18 : f32 to vector<8x256xf32>
    %85 = arith.addf %84, %83 : vector<8x256xf32>
    %86 = arith.divf %84, %85 : vector<8x256xf32>
    %87 = vector.extract_strided_slice %86 {offsets = [0, 0], sizes = [8, 128], strides = [1, 1]} : vector<8x256xf32> to vector<8x128xf32>
    %88 = vector.extract_strided_slice %86 {offsets = [0, 128], sizes = [8, 128], strides = [1, 1]} : vector<8x256xf32> to vector<8x128xf32>
    %89 = vector.extract_strided_slice %77 {offsets = [0, 256], sizes = [8, 128], strides = [1, 1]} : vector<8x384xf32> to vector<8x128xf32>
    %90 = vector.extract_strided_slice %78 {offsets = [0, 256], sizes = [8, 128], strides = [1, 1]} : vector<8x384xf32> to vector<8x128xf32>
    %91 = arith.addf %90, %9 : vector<8x128xf32>
    %92 = arith.mulf %87, %91 : vector<8x128xf32>
    %93 = arith.addf %89, %92 : vector<8x128xf32>
    %94 = math.tanh %93 : vector<8x128xf32>
    %cst_19 = arith.constant 1.000000e+00 : f32
    %95 = vector.broadcast %cst_19 : f32 to vector<8x128xf32>
    %96 = arith.subf %95, %88 : vector<8x128xf32>
    %97 = arith.mulf %96, %94 : vector<8x128xf32>
    %98 = arith.mulf %88, %71 : vector<8x128xf32>
    %99 = arith.addf %97, %98 : vector<8x128xf32>
    %100 = arith.addf %72, %99 : vector<8x128xf32>
    %101 = vector.extract_strided_slice %5 {offsets = [24, 0], sizes = [8, 384], strides = [1, 1]} : vector<64x384xf32> to vector<8x384xf32>
    %102 = vector.extract_strided_slice %5 {offsets = [32, 0], sizes = [8, 384], strides = [1, 1]} : vector<64x384xf32> to vector<8x384xf32>
    %103 = vector.shape_cast %14 : vector<1x384xi1> to vector<1x384xi1>
    %104 = vector.broadcast %103 : vector<1x384xi1> to vector<8x384xi1>
    %105 = arith.select %104, %101, %102 : vector<8x384xi1>, vector<8x384xf32>
    %cst_20 = arith.constant dense<0.000000e+00> : vector<8x384xf32>
    %106 = tpu.matmul %99, %6, %cst_20 {dimension_numbers = #tpu.dot_dimension_numbers<[1], [0], [0], [1], [0, 0, 1, 1], [], []>} : vector<8x128xf32>, vector<128x384xf32>, vector<8x384xf32> -> vector<8x384xf32>
    %107 = vector.extract_strided_slice %105 {offsets = [0, 0], sizes = [8, 256], strides = [1, 1]} : vector<8x384xf32> to vector<8x256xf32>
    %108 = vector.extract_strided_slice %106 {offsets = [0, 0], sizes = [8, 256], strides = [1, 1]} : vector<8x384xf32> to vector<8x256xf32>
    %109 = arith.addf %107, %108 : vector<8x256xf32>
    %110 = arith.negf %109 : vector<8x256xf32>
    %111 = math.exp %110 : vector<8x256xf32>
    %cst_21 = arith.constant 1.000000e+00 : f32
    %112 = vector.broadcast %cst_21 : f32 to vector<8x256xf32>
    %113 = arith.addf %112, %111 : vector<8x256xf32>
    %114 = arith.divf %112, %113 : vector<8x256xf32>
    %115 = vector.extract_strided_slice %114 {offsets = [0, 0], sizes = [8, 128], strides = [1, 1]} : vector<8x256xf32> to vector<8x128xf32>
    %116 = vector.extract_strided_slice %114 {offsets = [0, 128], sizes = [8, 128], strides = [1, 1]} : vector<8x256xf32> to vector<8x128xf32>
    %117 = vector.extract_strided_slice %105 {offsets = [0, 256], sizes = [8, 128], strides = [1, 1]} : vector<8x384xf32> to vector<8x128xf32>
    %118 = vector.extract_strided_slice %106 {offsets = [0, 256], sizes = [8, 128], strides = [1, 1]} : vector<8x384xf32> to vector<8x128xf32>
    %119 = arith.addf %118, %9 : vector<8x128xf32>
    %120 = arith.mulf %115, %119 : vector<8x128xf32>
    %121 = arith.addf %117, %120 : vector<8x128xf32>
    %122 = math.tanh %121 : vector<8x128xf32>
    %cst_22 = arith.constant 1.000000e+00 : f32
    %123 = vector.broadcast %cst_22 : f32 to vector<8x128xf32>
    %124 = arith.subf %123, %116 : vector<8x128xf32>
    %125 = arith.mulf %124, %122 : vector<8x128xf32>
    %126 = arith.mulf %116, %99 : vector<8x128xf32>
    %127 = arith.addf %125, %126 : vector<8x128xf32>
    %128 = arith.addf %100, %127 : vector<8x128xf32>
    %129 = vector.extract_strided_slice %5 {offsets = [32, 0], sizes = [8, 384], strides = [1, 1]} : vector<64x384xf32> to vector<8x384xf32>
    %130 = vector.extract_strided_slice %5 {offsets = [24, 0], sizes = [8, 384], strides = [1, 1]} : vector<64x384xf32> to vector<8x384xf32>
    %131 = vector.shape_cast %14 : vector<1x384xi1> to vector<1x384xi1>
    %132 = vector.broadcast %131 : vector<1x384xi1> to vector<8x384xi1>
    %133 = arith.select %132, %129, %130 : vector<8x384xi1>, vector<8x384xf32>
    %cst_23 = arith.constant dense<0.000000e+00> : vector<8x384xf32>
    %134 = tpu.matmul %127, %6, %cst_23 {dimension_numbers = #tpu.dot_dimension_numbers<[1], [0], [0], [1], [0, 0, 1, 1], [], []>} : vector<8x128xf32>, vector<128x384xf32>, vector<8x384xf32> -> vector<8x384xf32>
    %135 = vector.extract_strided_slice %133 {offsets = [0, 0], sizes = [8, 256], strides = [1, 1]} : vector<8x384xf32> to vector<8x256xf32>
    %136 = vector.extract_strided_slice %134 {offsets = [0, 0], sizes = [8, 256], strides = [1, 1]} : vector<8x384xf32> to vector<8x256xf32>
    %137 = arith.addf %135, %136 : vector<8x256xf32>
    %138 = arith.negf %137 : vector<8x256xf32>
    %139 = math.exp %138 : vector<8x256xf32>
    %cst_24 = arith.constant 1.000000e+00 : f32
    %140 = vector.broadcast %cst_24 : f32 to vector<8x256xf32>
    %141 = arith.addf %140, %139 : vector<8x256xf32>
    %142 = arith.divf %140, %141 : vector<8x256xf32>
    %143 = vector.extract_strided_slice %142 {offsets = [0, 0], sizes = [8, 128], strides = [1, 1]} : vector<8x256xf32> to vector<8x128xf32>
    %144 = vector.extract_strided_slice %142 {offsets = [0, 128], sizes = [8, 128], strides = [1, 1]} : vector<8x256xf32> to vector<8x128xf32>
    %145 = vector.extract_strided_slice %133 {offsets = [0, 256], sizes = [8, 128], strides = [1, 1]} : vector<8x384xf32> to vector<8x128xf32>
    %146 = vector.extract_strided_slice %134 {offsets = [0, 256], sizes = [8, 128], strides = [1, 1]} : vector<8x384xf32> to vector<8x128xf32>
    %147 = arith.addf %146, %9 : vector<8x128xf32>
    %148 = arith.mulf %143, %147 : vector<8x128xf32>
    %149 = arith.addf %145, %148 : vector<8x128xf32>
    %150 = math.tanh %149 : vector<8x128xf32>
    %cst_25 = arith.constant 1.000000e+00 : f32
    %151 = vector.broadcast %cst_25 : f32 to vector<8x128xf32>
    %152 = arith.subf %151, %144 : vector<8x128xf32>
    %153 = arith.mulf %152, %150 : vector<8x128xf32>
    %154 = arith.mulf %144, %127 : vector<8x128xf32>
    %155 = arith.addf %153, %154 : vector<8x128xf32>
    %156 = arith.addf %128, %155 : vector<8x128xf32>
    %157 = vector.extract_strided_slice %5 {offsets = [40, 0], sizes = [8, 384], strides = [1, 1]} : vector<64x384xf32> to vector<8x384xf32>
    %158 = vector.extract_strided_slice %5 {offsets = [16, 0], sizes = [8, 384], strides = [1, 1]} : vector<64x384xf32> to vector<8x384xf32>
    %159 = vector.shape_cast %14 : vector<1x384xi1> to vector<1x384xi1>
    %160 = vector.broadcast %159 : vector<1x384xi1> to vector<8x384xi1>
    %161 = arith.select %160, %157, %158 : vector<8x384xi1>, vector<8x384xf32>
    %cst_26 = arith.constant dense<0.000000e+00> : vector<8x384xf32>
    %162 = tpu.matmul %155, %6, %cst_26 {dimension_numbers = #tpu.dot_dimension_numbers<[1], [0], [0], [1], [0, 0, 1, 1], [], []>} : vector<8x128xf32>, vector<128x384xf32>, vector<8x384xf32> -> vector<8x384xf32>
    %163 = vector.extract_strided_slice %161 {offsets = [0, 0], sizes = [8, 256], strides = [1, 1]} : vector<8x384xf32> to vector<8x256xf32>
    %164 = vector.extract_strided_slice %162 {offsets = [0, 0], sizes = [8, 256], strides = [1, 1]} : vector<8x384xf32> to vector<8x256xf32>
    %165 = arith.addf %163, %164 : vector<8x256xf32>
    %166 = arith.negf %165 : vector<8x256xf32>
    %167 = math.exp %166 : vector<8x256xf32>
    %cst_27 = arith.constant 1.000000e+00 : f32
    %168 = vector.broadcast %cst_27 : f32 to vector<8x256xf32>
    %169 = arith.addf %168, %167 : vector<8x256xf32>
    %170 = arith.divf %168, %169 : vector<8x256xf32>
    %171 = vector.extract_strided_slice %170 {offsets = [0, 0], sizes = [8, 128], strides = [1, 1]} : vector<8x256xf32> to vector<8x128xf32>
    %172 = vector.extract_strided_slice %170 {offsets = [0, 128], sizes = [8, 128], strides = [1, 1]} : vector<8x256xf32> to vector<8x128xf32>
    %173 = vector.extract_strided_slice %161 {offsets = [0, 256], sizes = [8, 128], strides = [1, 1]} : vector<8x384xf32> to vector<8x128xf32>
    %174 = vector.extract_strided_slice %162 {offsets = [0, 256], sizes = [8, 128], strides = [1, 1]} : vector<8x384xf32> to vector<8x128xf32>
    %175 = arith.addf %174, %9 : vector<8x128xf32>
    %176 = arith.mulf %171, %175 : vector<8x128xf32>
    %177 = arith.addf %173, %176 : vector<8x128xf32>
    %178 = math.tanh %177 : vector<8x128xf32>
    %cst_28 = arith.constant 1.000000e+00 : f32
    %179 = vector.broadcast %cst_28 : f32 to vector<8x128xf32>
    %180 = arith.subf %179, %172 : vector<8x128xf32>
    %181 = arith.mulf %180, %178 : vector<8x128xf32>
    %182 = arith.mulf %172, %155 : vector<8x128xf32>
    %183 = arith.addf %181, %182 : vector<8x128xf32>
    %184 = arith.addf %156, %183 : vector<8x128xf32>
    %185 = vector.extract_strided_slice %5 {offsets = [48, 0], sizes = [8, 384], strides = [1, 1]} : vector<64x384xf32> to vector<8x384xf32>
    %186 = vector.extract_strided_slice %5 {offsets = [8, 0], sizes = [8, 384], strides = [1, 1]} : vector<64x384xf32> to vector<8x384xf32>
    %187 = vector.shape_cast %14 : vector<1x384xi1> to vector<1x384xi1>
    %188 = vector.broadcast %187 : vector<1x384xi1> to vector<8x384xi1>
    %189 = arith.select %188, %185, %186 : vector<8x384xi1>, vector<8x384xf32>
    %cst_29 = arith.constant dense<0.000000e+00> : vector<8x384xf32>
    %190 = tpu.matmul %183, %6, %cst_29 {dimension_numbers = #tpu.dot_dimension_numbers<[1], [0], [0], [1], [0, 0, 1, 1], [], []>} : vector<8x128xf32>, vector<128x384xf32>, vector<8x384xf32> -> vector<8x384xf32>
    %191 = vector.extract_strided_slice %189 {offsets = [0, 0], sizes = [8, 256], strides = [1, 1]} : vector<8x384xf32> to vector<8x256xf32>
    %192 = vector.extract_strided_slice %190 {offsets = [0, 0], sizes = [8, 256], strides = [1, 1]} : vector<8x384xf32> to vector<8x256xf32>
    %193 = arith.addf %191, %192 : vector<8x256xf32>
    %194 = arith.negf %193 : vector<8x256xf32>
    %195 = math.exp %194 : vector<8x256xf32>
    %cst_30 = arith.constant 1.000000e+00 : f32
    %196 = vector.broadcast %cst_30 : f32 to vector<8x256xf32>
    %197 = arith.addf %196, %195 : vector<8x256xf32>
    %198 = arith.divf %196, %197 : vector<8x256xf32>
    %199 = vector.extract_strided_slice %198 {offsets = [0, 0], sizes = [8, 128], strides = [1, 1]} : vector<8x256xf32> to vector<8x128xf32>
    %200 = vector.extract_strided_slice %198 {offsets = [0, 128], sizes = [8, 128], strides = [1, 1]} : vector<8x256xf32> to vector<8x128xf32>
    %201 = vector.extract_strided_slice %189 {offsets = [0, 256], sizes = [8, 128], strides = [1, 1]} : vector<8x384xf32> to vector<8x128xf32>
    %202 = vector.extract_strided_slice %190 {offsets = [0, 256], sizes = [8, 128], strides = [1, 1]} : vector<8x384xf32> to vector<8x128xf32>
    %203 = arith.addf %202, %9 : vector<8x128xf32>
    %204 = arith.mulf %199, %203 : vector<8x128xf32>
    %205 = arith.addf %201, %204 : vector<8x128xf32>
    %206 = math.tanh %205 : vector<8x128xf32>
    %cst_31 = arith.constant 1.000000e+00 : f32
    %207 = vector.broadcast %cst_31 : f32 to vector<8x128xf32>
    %208 = arith.subf %207, %200 : vector<8x128xf32>
    %209 = arith.mulf %208, %206 : vector<8x128xf32>
    %210 = arith.mulf %200, %183 : vector<8x128xf32>
    %211 = arith.addf %209, %210 : vector<8x128xf32>
    %212 = arith.addf %184, %211 : vector<8x128xf32>
    %213 = vector.extract_strided_slice %5 {offsets = [56, 0], sizes = [8, 384], strides = [1, 1]} : vector<64x384xf32> to vector<8x384xf32>
    %214 = vector.extract_strided_slice %5 {offsets = [0, 0], sizes = [8, 384], strides = [1, 1]} : vector<64x384xf32> to vector<8x384xf32>
    %215 = vector.shape_cast %14 : vector<1x384xi1> to vector<1x384xi1>
    %216 = vector.broadcast %215 : vector<1x384xi1> to vector<8x384xi1>
    %217 = arith.select %216, %213, %214 : vector<8x384xi1>, vector<8x384xf32>
    %cst_32 = arith.constant dense<0.000000e+00> : vector<8x384xf32>
    %218 = tpu.matmul %211, %6, %cst_32 {dimension_numbers = #tpu.dot_dimension_numbers<[1], [0], [0], [1], [0, 0, 1, 1], [], []>} : vector<8x128xf32>, vector<128x384xf32>, vector<8x384xf32> -> vector<8x384xf32>
    %219 = vector.extract_strided_slice %217 {offsets = [0, 0], sizes = [8, 256], strides = [1, 1]} : vector<8x384xf32> to vector<8x256xf32>
    %220 = vector.extract_strided_slice %218 {offsets = [0, 0], sizes = [8, 256], strides = [1, 1]} : vector<8x384xf32> to vector<8x256xf32>
    %221 = arith.addf %219, %220 : vector<8x256xf32>
    %222 = arith.negf %221 : vector<8x256xf32>
    %223 = math.exp %222 : vector<8x256xf32>
    %cst_33 = arith.constant 1.000000e+00 : f32
    %224 = vector.broadcast %cst_33 : f32 to vector<8x256xf32>
    %225 = arith.addf %224, %223 : vector<8x256xf32>
    %226 = arith.divf %224, %225 : vector<8x256xf32>
    %227 = vector.extract_strided_slice %226 {offsets = [0, 0], sizes = [8, 128], strides = [1, 1]} : vector<8x256xf32> to vector<8x128xf32>
    %228 = vector.extract_strided_slice %226 {offsets = [0, 128], sizes = [8, 128], strides = [1, 1]} : vector<8x256xf32> to vector<8x128xf32>
    %229 = vector.extract_strided_slice %217 {offsets = [0, 256], sizes = [8, 128], strides = [1, 1]} : vector<8x384xf32> to vector<8x128xf32>
    %230 = vector.extract_strided_slice %218 {offsets = [0, 256], sizes = [8, 128], strides = [1, 1]} : vector<8x384xf32> to vector<8x128xf32>
    %231 = arith.addf %230, %9 : vector<8x128xf32>
    %232 = arith.mulf %227, %231 : vector<8x128xf32>
    %233 = arith.addf %229, %232 : vector<8x128xf32>
    %234 = math.tanh %233 : vector<8x128xf32>
    %cst_34 = arith.constant 1.000000e+00 : f32
    %235 = vector.broadcast %cst_34 : f32 to vector<8x128xf32>
    %236 = arith.subf %235, %228 : vector<8x128xf32>
    %237 = arith.mulf %236, %234 : vector<8x128xf32>
    %238 = arith.mulf %228, %211 : vector<8x128xf32>
    %239 = arith.addf %237, %238 : vector<8x128xf32>
    %240 = arith.addf %212, %239 : vector<8x128xf32>
    %c0_35 = arith.constant 0 : index
    %c0_36 = arith.constant 0 : index
    %241 = vector.load %arg6[%c0_35, %c0_36] : memref<8x128xf32, #tpu.memory_space<vmem>>, vector<8x128xf32>
    tpu.vector_store %arg6[%c0_35, %c0_36], %240 {strides = array<i32>} : memref<8x128xf32, #tpu.memory_space<vmem>>, vector<8x128xf32>,
    return
  }
  func.func @transform_0(%arg0: i32) -> (i32, i32) {
    %c0_i32 = arith.constant 0 : i32
    %c0_i32_0 = arith.constant 0 : i32
    %c0_i32_1 = arith.constant 0 : i32
    return %c0_i32, %c0_i32_0 : i32, i32
  }
  func.func @transform_1(%arg0: i32) -> (i32, i32) {
    %c0_i32 = arith.constant 0 : i32
    %c0_i32_0 = arith.constant 0 : i32
    %c0_i32_1 = arith.constant 0 : i32
    return %c0_i32, %c0_i32_0 : i32, i32
  }
  func.func @transform_2(%arg0: i32) -> (i32, i32) {
    %c0_i32 = arith.constant 0 : i32
    %c0_i32_0 = arith.constant 0 : i32
    %c0_i32_1 = arith.constant 0 : i32
    return %c0_i32, %c0_i32_0 : i32, i32
  }
  func.func @transform_3(%arg0: i32) -> (i32, i32) {
    %c0_i32 = arith.constant 0 : i32
    %c0_i32_0 = arith.constant 0 : i32
    %c0_i32_1 = arith.constant 0 : i32
    return %c0_i32, %c0_i32_0 : i32, i32
  }
  func.func @transform_4(%arg0: i32) -> (i32, i32) {
    %c0_i32 = arith.constant 0 : i32
    %c0_i32_0 = arith.constant 0 : i32
    %c0_i32_1 = arith.constant 0 : i32
    return %c0_i32, %c0_i32_0 : i32, i32
  }
  func.func @transform_5(%arg0: i32) -> (i32, i32) {
    %c0_i32 = arith.constant 0 : i32
    %c0_i32_0 = arith.constant 0 : i32
    %c0_i32_1 = arith.constant 0 : i32
    return %c0_i32, %c0_i32_0 : i32, i32
  }
}

</mosaic_0001>

<bundles_post_ra>
// kernel: graphsage_bigru_forward.1
= control target key start
LH: loop header
LB: loop body
LE: loop exit
PB: predicated region body
PF: predicated region fallthrough
CT: control target
= control target key end

     0   :  { %10 = vsyncpa [#allocation3], 0  ;;  %s2352_s18 = smov [#allocation2]   ;;  %s3484_s0 = inlined_call_operand.vmem [shape: f32[64,16], index: 0, kind: input, shape index: {}]   ;;  %s3485_s1 = inlined_call_operand.vmem [shape: f32[16,384], index: 1, kind: input, shape index: {}]   ;;  %s3486_s2 = inlined_call_operand.vmem [shape: f32[1,384], index: 2, kind: input, shape index: {}]   ;;  %s3487_s3 = inlined_call_operand.hbm [shape: f32[128,384], index: 3, kind: input, shape index: {}]   ;;  %s3488_s4 = inlined_call_operand.vmem [shape: f32[1,128], index: 4, kind: input, shape index: {}]   ;;  %s3489_s5 = inlined_call_operand.vmem [shape: f32[8,128], index: 5, kind: output, shape index: {}]  }
   0x1   :  { %s22_s19 = sshll.u32 %s2352_s18, 4  ;;  %s23_s19 = int_to_ptr.vmem [resolvable:$true] %s22_s19 }
   0x2   :  { %s2338_s20 = scalar_lea.vmem %s23_s19, 6144  ;;  %p2343_p1 = scmp.lt.s32.totalorder %s23_s19, %s23_s19 }
   0x3   :  { %p2339_p0 = scmp.ne.s32.totalorder %s23_s19, %s2338_s20  ;;  %p2344_p2 = scmp.lt.s32.totalorder %s2338_s20, %s2338_s20 }
   0x5   :  { %p2345_p3 = por %p2344_p2, %p2343_p1 }
   0x7   :  { %p2346_p4 = pnand %p2345_p3, %p2339_p0 }
   0x9   :  { %2349 = shalt.err (!%p2346_p4)
}
   0xa   :  { %s2353_s21 = smov 384   ;;  %s2354_s22 = smov 24  }
   0xb   :  { %28 = dma.hbm_to_vmem [thread:$0]  %s3487_s3, 6144, %s23_s19, [#allocation3], %s2353_s21, %s2353_s21, %s2354_s22  }
   0xc   :  { %2350 = dma.done.wait [#allocation3], 6144  }
   0xd   :  { %2351 = vsyncadd [#allocation3], 4294961152  ;;  %v3490_v0 = vmov 0.0   ;;  %v46_v1 = vld [vmem:[%s3485_s1 + $0x20] sm:$0xff]  ;;  %v45_v2 = vld [vmem:[%s3485_s1 + $0x18] sm:$0xff]  ;;  %vm65_vm0 = vcmask 130048   ;;  %v50_v63 = vlaneseq }
   0xe   :  { %154 = vmatprep.mubr.f32.mxu0 %v3490_v0  ;;  %v43_v3 = vld [vmem:[%s3485_s1 + $0x8] sm:$0xff]  ;;  %118 = vmatprep.subr.mxu0 %v46_v1  ;;  %v42_v4 = vld [vmem:[%s3485_s1] sm:$0xff]  ;;  %v2406_v6 = vld [vmem:[#allocation2 + $0x170] sm:$0xff]  ;;  %vm2356_vm1 = vmmov 0  }
   0xf   :  { %v34_v5 = vld [vmem:[%s3484_s0] sm:$0xff]  ;;  %119 = vmatpush1.msra.mxu0 %v45_v2  ;;  %3561 = vst [vmem:[#allocation5_spill] sm:$0xff] %v2406_v6  ;;  %v2409_v7 = vld [vmem:[#allocation2 + $0x168] sm:$0xff]  ;;  %v2411_v8 = vld [vmem:[#allocation2 + $0x158] sm:$0xff]  ;;  %v51_v1 = vshrl.u32 %v50_v63, 7 }
  0x10   :  { %1904 = vmatprep.mubr.msk.f32.mxu1 %vm65_vm0, %v34_v5  ;;  %120 = vmatprep.subr.mxu0 %v43_v3  ;;  %v2415_v9 = vld [vmem:[#allocation2 + $0x150] sm:$0xff]  ;;  %v35_v10 = vld [vmem:[%s3484_s0 + $0x8] sm:$0xff]  ;;  %v2422_v11 = vld [vmem:[#allocation2 + $0x140] sm:$0xff] }
  0x11   :  { %121 = vmatpush1.msra.mxu0 %v42_v4  ;;  %v2425_v12 = vld [vmem:[#allocation2 + $0x138] sm:$0xff]  ;;  %v2428_v13 = vld [vmem:[#allocation2 + $0x128] sm:$0xff]  ;;  %v2435_v15 = vld [vmem:[#allocation2 + $0x120] sm:$0xff]  ;;  %v52_v2 = vsub.s32 0, %v51_v1 }
  0x12   :  { %1721 = vmatmul.mubr.msk.f32.vlgmr.msra.gmra.mxu0 %vm65_vm0, %v34_v5  ;;  %382 = vmatprep.subr.mxu0 %v2406_v6  ;;  %v47_v14 = vld [vmem:[%s3485_s1 + $0x28] sm:$0xff]  ;;  %v36_v16 = vld [vmem:[%s3484_s0 + $0x10] sm:$0xff]  ;;  %v2448_v19 = vld [vmem:[#allocation2 + $0xf8] sm:$0xff]  ;;  %v56_v5 = vsub.s32 1, %v51_v1 }
  0x13   :  { %383 = vmatpush1.msra.mxu0 %v2409_v7  ;;  %160 = vmatprep.mubr.f32.mxu0 %v3490_v0  ;;  %v2442_v17 = vld [vmem:[#allocation2 + $0x110] sm:$0xff]  ;;  %v2445_v18 = vld [vmem:[#allocation2 + $0x108] sm:$0xff]  ;;  %v37_v22 = vld [vmem:[%s3484_s0 + $0x18] sm:$0xff] }
  0x14   :  { %384 = vmatprep.subr.mxu0 %v2411_v8  ;;  %1900 = vmatprep.subr.mxu1 %v47_v14  ;;  %v44_v20 = vld [vmem:[%s3485_s1 + $0x10] sm:$0xff]  ;;  %v2462_v23 = vld [vmem:[#allocation2 + $0xe0] sm:$0xff]  ;;  %v2465_v24 = vld [vmem:[#allocation2 + $0xd8] sm:$0xff] }
  0x15   :  { %385 = vmatpush1.msra.mxu0 %v2415_v9  ;;  %1901 = vmatpush3.msra.mxu1 %v47_v14  ;;  %v2455_v21 = vld [vmem:[#allocation2 + $0xf0] sm:$0xff]  ;;  %v2468_v25 = vld [vmem:[#allocation2 + $0xc8] sm:$0xff]  ;;  %v2472_v26 = vld [vmem:[#allocation2 + $0xc0] sm:$0xff] }
  0x16   :  { %1722 = vmatmul.mubr.msk.f32.gmra.mxu0 %vm65_vm0, %v35_v10  ;;  %386 = vmatprep.subr.mxu0 %v2422_v11  ;;  %v38_v27 = vld [vmem:[%s3484_s0 + $0x20] sm:$0xff]  ;;  %v2479_v28 = vld [vmem:[#allocation2 + $0xb0] sm:$0xff]  ;;  %v2482_v29 = vld [vmem:[#allocation2 + $0xa8] sm:$0xff] }
  0x17   :  { %387 = vmatpush1.msra.mxu0 %v2425_v12  ;;  %166 = vmatprep.mubr.f32.mxu0 %v3490_v0  ;;  %v2486_v30 = vld [vmem:[#allocation2 + $0x98] sm:$0xff]  ;;  %v2491_v31 = vld [vmem:[#allocation2 + $0x90] sm:$0xff]  ;;  %v39_v32 = vld [vmem:[%s3484_s0 + $0x28] sm:$0xff] }
  0x18   :  { %388 = vmatprep.subr.mxu0 %v2428_v13  ;;  %1902 = vmatprep.subr.mxu1 %v44_v20  ;;  %v2498_v33 = vld [vmem:[#allocation2 + $0x80] sm:$0xff]  ;;  %v2501_v34 = vld [vmem:[#allocation2 + $0x78] sm:$0xff]  ;;  %v2505_v35 = vld [vmem:[#allocation2 + $0x68] sm:$0xff] }
  0x19   :  { %389 = vmatpush1.msra.mxu0 %v2435_v15  ;;  %1903 = vmatpush3.msra.mxu1 %v44_v20  ;;  %v2510_v36 = vld [vmem:[#allocation2 + $0x60] sm:$0xff]  ;;  %v40_v37 = vld [vmem:[%s3484_s0 + $0x30] sm:$0xff]  ;;  %v2520_v39 = vld [vmem:[#allocation2 + $0x48] sm:$0xff] }
  0x1a   :  { %1723 = vmatmul.mubr.msk.f32.gmra.mxu0 %vm65_vm0, %v36_v16  ;;  %390 = vmatprep.subr.mxu0 %v2442_v17  ;;  %v2517_v38 = vld [vmem:[#allocation2 + $0x50] sm:$0xff]  ;;  %3562 = vst [vmem:[#allocation6_spill] sm:$0xff] %v2520_v39  ;;  %v2524_v40 = vld [vmem:[#allocation2 + $0x38] sm:$0xff]  ;;  %v2536_v43 = vld [vmem:[#allocation2 + $0x20] sm:$0xff] }
  0x1b   :  { %391 = vmatpush1.msra.mxu0 %v2445_v18  ;;  %172 = vmatprep.mubr.f32.mxu0 %v3490_v0  ;;  %3563 = vst [vmem:[#allocation7_spill] sm:$0xff] %v2524_v40  ;;  %v2529_v41 = vld [vmem:[#allocation2 + $0x30] sm:$0xff]  ;;  %v41_v42 = vld [vmem:[%s3484_s0 + $0x38] sm:$0xff]  ;;  %3565 = vst [vmem:[#allocation9_spill] sm:$0xff] %v2536_v43 }
  0x1c   :  { %392 = vmatprep.subr.mxu0 %v2448_v19  ;;  %1905 = vmatmul.mubr.msk.f32.vlgmr.msra.gmra.mxu1 %vm65_vm0, %v35_v10  ;;  %3564 = vst [vmem:[#allocation8_spill] sm:$0xff] %v2529_v41  ;;  %v2539_v44 = vld [vmem:[#allocation2 + $0x18] sm:$0xff]  ;;  %v2543_v45 = vld [vmem:[#allocation2 + $0x8] sm:$0xff]  ;;  %v2550_v47 = vld [vmem:[#allocation2] sm:$0xff] }
  0x1d   :  { %393 = vmatpush1.msra.mxu0 %v2455_v21  ;;  %1907 = vmatprep.mubr.msk.f32.mxu1 %vm65_vm0, %v36_v16  ;;  %3566 = vst [vmem:[#allocation10_spill] sm:$0xff] %v2539_v44  ;;  %3567 = vst [vmem:[#allocation11_spill] sm:$0xff] %v2543_v45  ;;  %v2546_v46 = vld [vmem:[#allocation2 + $0x178] sm:$0xff]  ;;  %v2554_v48 = vld [vmem:[#allocation2 + $0x160] sm:$0xff] }
  0x1e   :  { %1724 = vmatmul.mubr.msk.f32.gmra.mxu0 %vm65_vm0, %v37_v22  ;;  %394 = vmatprep.subr.mxu0 %v2462_v23  ;;  %3568 = vst [vmem:[#allocation12_spill] sm:$0xff] %v2550_v47  ;;  %v2560_v49 = vld [vmem:[#allocation2 + $0x148] sm:$0xff]  ;;  %v2565_v50 = vld [vmem:[#allocation2 + $0x130] sm:$0xff]  ;;  %v2572_v51 = vld [vmem:[#allocation2 + $0x118] sm:$0xff] }
  0x1f   :  { %395 = vmatpush1.msra.mxu0 %v2465_v24  ;;  %178 = vmatprep.mubr.f32.mxu0 %v3490_v0  ;;  %v2578_v52 = vld [vmem:[#allocation2 + $0x100] sm:$0xff]  ;;  %v2584_v53 = vld [vmem:[#allocation2 + $0xe8] sm:$0xff]  ;;  %v2590_v54 = vld [vmem:[#allocation2 + $0xd0] sm:$0xff] }
  0x20   :  { %396 = vmatprep.subr.mxu0 %v2468_v25  ;;  %1908 = vmatmul.mubr.msk.f32.gmra.mxu1 %vm65_vm0, %v37_v22  ;;  %v2596_v55 = vld [vmem:[#allocation2 + $0xb8] sm:$0xff]  ;;  %v2602_v56 = vld [vmem:[#allocation2 + $0xa0] sm:$0xff]  ;;  %v2608_v57 = vld [vmem:[#allocation2 + $0x88] sm:$0xff] }
  0x21   :  { %397 = vmatpush1.msra.mxu0 %v2472_v26  ;;  %1910 = vmatprep.mubr.msk.f32.mxu1 %vm65_vm0, %v38_v27  ;;  %v2614_v58 = vld [vmem:[#allocation2 + $0x70] sm:$0xff]  ;;  %v2620_v59 = vld [vmem:[#allocation2 + $0x58] sm:$0xff]  ;;  %v2626_v60 = vld [vmem:[#allocation2 + $0x40] sm:$0xff] }
  0x22   :  { %1725 = vmatmul.mubr.msk.f32.gmra.mxu0 %vm65_vm0, %v38_v27  ;;  %398 = vmatprep.subr.mxu0 %v2479_v28  ;;  %3569 = vst [vmem:[#allocation13_spill] sm:$0xff] %v2620_v59  ;;  %3570 = vst [vmem:[#allocation14_spill] sm:$0xff] %v2626_v60  ;;  %v2632_v61 = vld [vmem:[#allocation2 + $0x28] sm:$0xff]  ;;  %v2638_v62 = vld [vmem:[#allocation2 + $0x10] sm:$0xff] }
  0x23   :  { %399 = vmatpush1.msra.mxu0 %v2482_v29  ;;  %184 = vmatprep.mubr.f32.mxu0 %v3490_v0  ;;  %3571 = vst [vmem:[#allocation15_spill] sm:$0xff] %v2632_v61  ;;  %3572 = vst [vmem:[#allocation16_spill] sm:$0xff] %v2638_v62  ;;  %v48_v3 = vld [vmem:[%s3486_s2] sm:$0x7] }
  0x24   :  { %400 = vmatprep.subr.mxu0 %v2486_v30  ;;  %1911 = vmatmul.mubr.msk.f32.gmra.mxu1 %vm65_vm0, %v39_v32  ;;  %v2697_v14 = vrot.slane %v48_v3, %v52_v2  ;;  %v2699_v20 = vrot.slane %v48_v3, %v56_v5 }
  0x25   :  { %401 = vmatpush1.msra.mxu0 %v2491_v31  ;;  %1913 = vmatprep.mubr.msk.f32.mxu1 %vm65_vm0, %v40_v37 }
  0x26   :  { %1726 = vmatmul.mubr.msk.f32.gmra.mxu0 %vm65_vm0, %v39_v32  ;;  %402 = vmatprep.subr.mxu0 %v2498_v33  ;;  %v2702_v32 = vand.u32 127, %v50_v63 }
  0x27   :  { %403 = vmatpush1.msra.mxu0 %v2501_v34  ;;  %190 = vmatprep.mubr.f32.mxu0 %v3490_v0 }
  0x28   :  { %404 = vmatprep.subr.mxu0 %v2505_v35  ;;  %1916 = vmatprep.subr.mxu1 %v3490_v0  ;;  %vm370_vm2 = vcmp.lt.s32.totalorder %v2702_v32, 32 }
  0x29   :  { %405 = vmatpush1.msra.mxu0 %v2510_v36  ;;  %1914 = vmatmul.mubr.msk.f32.gmra.mxu1 %vm65_vm0, %v41_v42 }
  0x2a   :  { %1727 = vmatmul.mubr.msk.f32.gmra.mxu0 %vm65_vm0, %v40_v37  ;;  %406 = vmatprep.subr.mxu0 %v2517_v38 }
  0x2b   :  { %407 = vmatpush1.msra.mxu0 %v2520_v39  ;;  %196 = vmatprep.mubr.f32.mxu0 %v3490_v0 }
  0x2c   :  { %408 = vmatprep.subr.mxu0 %v2524_v40  ;;  %1917 = vmatpush3.msra.mxu1 %v2546_v46 }
  0x2d   :  { %409 = vmatpush1.msra.mxu0 %v2529_v41  ;;  %1918 = vmatprep.subr.mxu1 %v3490_v0 }
  0x2e   :  { %1728 = vmatmul.mubr.msk.f32.gmra.mxu0 %vm65_vm0, %v41_v42  ;;  %410 = vmatprep.subr.mxu0 %v2536_v43  ;;  %v60_v42 = vsub.s32 2, %v51_v1 }
  0x2f   :  { %411 = vmatpush1.msra.mxu0 %v2539_v44  ;;  %446 = vmatprep.mubr.f32.mxu0 %v3490_v0 }
  0x30   :  { %412 = vmatprep.subr.mxu0 %v2543_v45  ;;  %1919 = vmatpush3.msra.mxu1 %v2554_v48  ;;  %v61_v5 = vrot.slane %v48_v3, %v60_v42 }
  0x31   :  { %413 = vmatpush1.msra.mxu0 %v2550_v47  ;;  %1920 = vmatprep.subr.mxu1 %v3490_v0 }
  0x32   :  { %447 = vmatmul.mubr.f32.vlgmr.msra.gmra.mxu0 %v3490_v0  ;;  %1948 = vmatprep.mubr.msk.f32.mxu1 %vm2356_vm1, %v3490_v0 }
  0x33   :  { %1921 = vmatpush3.msra.mxu1 %v2560_v49  ;;  %549 = vmatprep.subr.mxu0 %v2406_v6 }
  0x34   :  { %1922 = vmatprep.subr.mxu1 %v3490_v0  ;;  %550 = vmatpush1.msra.mxu0 %v2409_v7 }
  0x35   :  { %1923 = vmatpush3.msra.mxu1 %v2565_v50  ;;  %551 = vmatprep.subr.mxu0 %v2411_v8 }
  0x36   :  { %1924 = vmatprep.subr.mxu1 %v3490_v0  ;;  %552 = vmatpush1.msra.mxu0 %v2415_v9 }
  0x37   :  { %1925 = vmatpush3.msra.mxu1 %v2572_v51  ;;  %553 = vmatprep.subr.mxu0 %v2422_v11 }
  0x38   :  { %1926 = vmatprep.subr.mxu1 %v3490_v0  ;;  %554 = vmatpush1.msra.mxu0 %v2425_v12 }
  0x39   :  { %1927 = vmatpush3.msra.mxu1 %v2578_v52  ;;  %555 = vmatprep.subr.mxu0 %v2428_v13 }
  0x3a   :  { %1928 = vmatprep.subr.mxu1 %v3490_v0  ;;  %556 = vmatpush1.msra.mxu0 %v2435_v15 }
  0x3b   :  { %1929 = vmatpush3.msra.mxu1 %v2584_v53  ;;  %557 = vmatprep.subr.mxu0 %v2442_v17 }
  0x3c   :  { %1930 = vmatprep.subr.mxu1 %v3490_v0  ;;  %558 = vmatpush1.msra.mxu0 %v2445_v18 }
  0x3d   :  { %1931 = vmatpush3.msra.mxu1 %v2590_v54  ;;  %559 = vmatprep.subr.mxu0 %v2448_v19 }
  0x3e   :  { %1932 = vmatprep.subr.mxu1 %v3490_v0  ;;  %560 = vmatpush1.msra.mxu0 %v2455_v21 }
  0x3f   :  { %1933 = vmatpush3.msra.mxu1 %v2596_v55  ;;  %561 = vmatprep.subr.mxu0 %v2462_v23 }
  0x40   :  { %1934 = vmatprep.subr.mxu1 %v3490_v0  ;;  %562 = vmatpush1.msra.mxu0 %v2465_v24 }
  0x41   :  { %1935 = vmatpush3.msra.mxu1 %v2602_v56  ;;  %563 = vmatprep.subr.mxu0 %v2468_v25 }
  0x42   :  { %1936 = vmatprep.subr.mxu1 %v3490_v0  ;;  %564 = vmatpush1.msra.mxu0 %v2472_v26 }
  0x43   :  { %1937 = vmatpush3.msra.mxu1 %v2608_v57  ;;  %565 = vmatprep.subr.mxu0 %v2479_v28 }
  0x44   :  { %1938 = vmatprep.subr.mxu1 %v3490_v0  ;;  %566 = vmatpush1.msra.mxu0 %v2482_v29 }
  0x45   :  { %1939 = vmatpush3.msra.mxu1 %v2614_v58  ;;  %567 = vmatprep.subr.mxu0 %v2486_v30 }
  0x46   :  { %1940 = vmatprep.subr.mxu1 %v3490_v0  ;;  %568 = vmatpush1.msra.mxu0 %v2491_v31 }
  0x47   :  { %1941 = vmatpush3.msra.mxu1 %v2620_v59  ;;  %569 = vmatprep.subr.mxu0 %v2498_v33 }
  0x48   :  { %1942 = vmatprep.subr.mxu1 %v3490_v0  ;;  %570 = vmatpush1.msra.mxu0 %v2501_v34 }
  0x49   :  { %1943 = vmatpush3.msra.mxu1 %v2626_v60  ;;  %571 = vmatprep.subr.mxu0 %v2505_v35 }
  0x4a   :  { %1944 = vmatprep.subr.mxu1 %v3490_v0  ;;  %572 = vmatpush1.msra.mxu0 %v2510_v36 }
  0x4b   :  { %1945 = vmatpush3.msra.mxu1 %v2632_v61  ;;  %573 = vmatprep.subr.mxu0 %v2517_v38 }
  0x4c   :  { %1946 = vmatprep.subr.mxu1 %v3490_v0  ;;  %574 = vmatpush1.msra.mxu0 %v2520_v39 }
  0x4d   :  { %1947 = vmatpush3.msra.mxu1 %v2638_v62  ;;  %575 = vmatprep.subr.mxu0 %v2524_v40 }
  0x4e   :  { %1949 = vmatmul.mubr.f32.vlgmr.msra.gmra.mxu1 %v3490_v0  ;;  %1951 = vmatprep.subr.mxu1 %v3490_v0 }
  0x4f   :  { %1952 = vmatpush3.msra.mxu1 %v2546_v46  ;;  %576 = vmatpush1.msra.mxu0 %v2529_v41 }
  0x50   :  { %1953 = vmatprep.subr.mxu1 %v3490_v0  ;;  %577 = vmatprep.subr.mxu0 %v2536_v43 }
  0x51   :  { %1954 = vmatpush3.msra.mxu1 %v2554_v48  ;;  %578 = vmatpush1.msra.mxu0 %v2539_v44 }
  0x52   :  { %1955 = vmatprep.subr.mxu1 %v3490_v0  ;;  %579 = vmatprep.subr.mxu0 %v2543_v45 }
  0x53   :  { %1956 = vmatpush3.msra.mxu1 %v2560_v49  ;;  %580 = vmatpush1.msra.mxu0 %v2550_v47  ;;  %v365_v47 = vadd.s32 128, %v2702_v32 }
  0x54   :  { %1957 = vmatprep.subr.mxu1 %v3490_v0  ;;  %613 = vmatprep.mubr.f32.mxu0 %v3490_v0 }
  0x55   :  { %1958 = vmatpush3.msra.mxu1 %v2565_v50  ;;  %1983 = vmatprep.mubr.msk.f32.mxu1 %vm2356_vm1, %v3490_v0  ;;  %v368_v44 = vand.u32 127, %v365_v47 }
  0x56   :  { %1959 = vmatprep.subr.mxu1 %v3490_v0  ;;  %716 = vmatprep.subr.mxu0 %v2406_v6 }
  0x57   :  { %1960 = vmatpush3.msra.mxu1 %v2572_v51  ;;  %vm2721_vm3 = vcmp.lt.s32.totalorder %v368_v44, 32 }
  0x58   :  { %1961 = vmatprep.subr.mxu1 %v3490_v0 }
  0x59   :  { %1962 = vmatpush3.msra.mxu1 %v2578_v52 }
  0x5a   :  { %1963 = vmatprep.subr.mxu1 %v3490_v0 }
  0x5b   :  { %1964 = vmatpush3.msra.mxu1 %v2584_v53 }
  0x5c   :  { %1965 = vmatprep.subr.mxu1 %v3490_v0 }
  0x5d   :  { %1966 = vmatpush3.msra.mxu1 %v2590_v54 }
  0x5e   :  { %1967 = vmatprep.subr.mxu1 %v3490_v0 }
  0x5f   :  { %1968 = vmatpush3.msra.mxu1 %v2596_v55 }
  0x60   :  { %1969 = vmatprep.subr.mxu1 %v3490_v0 }
  0x61   :  { %1970 = vmatpush3.msra.mxu1 %v2602_v56 }
  0x62   :  { %1971 = vmatprep.subr.mxu1 %v3490_v0 }
  0x63   :  { %1972 = vmatpush3.msra.mxu1 %v2608_v57 }
  0x64   :  { %1973 = vmatprep.subr.mxu1 %v3490_v0 }
  0x65   :  { %1974 = vmatpush3.msra.mxu1 %v2614_v58 }
  0x66   :  { %1975 = vmatprep.subr.mxu1 %v3490_v0 }
  0x67   :  { %1976 = vmatpush3.msra.mxu1 %v2620_v59 }
  0x68   :  { %1977 = vmatprep.subr.mxu1 %v3490_v0 }
  0x69   :  { %1978 = vmatpush3.msra.mxu1 %v2626_v60  ;;  %v366_v60 = vadd.s32 256, %v2702_v32 }
  0x6a   :  { %1979 = vmatprep.subr.mxu1 %v3490_v0 }
  0x6b   :  { %1980 = vmatpush3.msra.mxu1 %v2632_v61  ;;  %v369_v59 = vand.u32 127, %v366_v60 }
  0x6c   :  { %1981 = vmatprep.subr.mxu1 %v3490_v0 }
  0x6d   :  { %1982 = vmatpush3.msra.mxu1 %v2638_v62  ;;  %vm2762_vm4 = vcmp.lt.s32.totalorder %v369_v59, 32 }
  0x6e   :  { %1986 = vmatprep.subr.mxu1 %v3490_v0 }
  0xd2   :  { %v2693_v4 = vpop.f32.mrf.mxu0 }
  0xd4   :  { %v2695_v10 = vpop.f32.mrf.mxu0 }
  0xd6   :  { %v162_v16 = vpop.f32.mrf.mxu0 }
  0xd7   :  { %v163_v22 = vadd.f32 %v162_v16, %v2697_v14 }
  0xd8   :  { %v164_v27 = vpop.f32.mrf.mxu0 }
  0xd9   :  { %v2705_v37 = vadd.f32 %v164_v27, %v2699_v20 }
  0xda   :  { %v168_v0 = vpop.f32.mrf.mxu0 }
  0xdb   :  { %3573 = vst [vmem:[#allocation17_spill] sm:$0xff] %v2705_v37  ;;  %v169_v6 = vadd.f32 %v168_v0, %v2697_v14 }
  0xdc   :  { %v170_v62 = vpop.f32.mrf.mxu0  ;;  %v1906_v63 = vpop.f32.mrf.mxu1 }
  0xdd   :  { %v2710_v2 = vadd.f32 %v170_v62, %v2699_v20  ;;  %v2716_v1 = vadd.f32 %v1906_v63, %v61_v5 }
  0xde   :  { %v174_v45 = vpop.f32.mrf.mxu0  ;;  %v269_v0 = vpop.f32.mrf.mxu1 }
  0xdf   :  { %3574 = vst [vmem:[#allocation18_spill] sm:$0xff] %v2710_v2  ;;  %v175_v16 = vadd.f32 %v174_v45, %v2697_v14  ;;  %3576 = vst [vmem:[#allocation20_spill] sm:$0xff] %v2716_v1  ;;  %v3577_v45 = vmov 0 }
  0xe0   :  { %v176_v61 = vpop.f32.mrf.mxu0  ;;  %v1909_v42 = vpop.f32.mrf.mxu1  ;;  %v3578_v45 = vsel %vm2721_vm3, 4294967295, %v3577_v45 }
  0xe1   :  { %v2714_v27 = vadd.f32 %v176_v61, %v2699_v20  ;;  %3579 = vst [vmem:[#allocation21_spill] sm:$0xff] %v3578_v45  ;;  %v2728_v61 = vadd.f32 %v1909_v42, %v61_v5 }
  0xe2   :  { %v180_v43 = vpop.f32.mrf.mxu0  ;;  %v279_v40 = vpop.f32.mrf.mxu1 }
  0xe3   :  { %3575 = vst [vmem:[#allocation19_spill] sm:$0xff] %v2714_v27  ;;  %v181_v62 = vadd.f32 %v180_v43, %v2697_v14  ;;  %3581 = vst [vmem:[#allocation23_spill] sm:$0xff] %v2728_v61  ;;  %v2739_v39 = vadd.f32 %v279_v40, %v61_v5 }
  0xe4   :  { %v182_v3 = vpop.f32.mrf.mxu0 }
  0xe5   :  { %v2726_v47 = vadd.f32 %v182_v3, %v2699_v20  ;;  %v2732_v63 = vsel %vm370_vm2, %v175_v16, %v181_v62  ;;  %v2736_v41 = vsel %vm370_vm2, %v181_v62, %v175_v16  ;;  %3584 = vst [vmem:[#allocation26_spill] sm:$0xff] %v2739_v39  ;;  %v1912_v16 = vpop.f32.mrf.mxu1 }
  0xe6   :  { %3582 = vst [vmem:[#allocation24_spill] sm:$0xff] %v2732_v63  ;;  %3583 = vst [vmem:[#allocation25_spill] sm:$0xff] %v2736_v41  ;;  %v186_v43 = vpop.f32.mrf.mxu0  ;;  %v2752_v60 = vadd.f32 %v1912_v16, %v61_v5 }
  0xe7   :  { %3580 = vst [vmem:[#allocation22_spill] sm:$0xff] %v2726_v47  ;;  %v187_v44 = vadd.f32 %v186_v43, %v2697_v14  ;;  %v289_v42 = vpop.f32.mrf.mxu1 }
  0xe8   :  { %v188_v63 = vpop.f32.mrf.mxu0  ;;  %3586 = vst [vmem:[#allocation28_spill] sm:$0xff] %v2752_v60 }
  0xe9   :  { %v2750_v62 = vadd.f32 %v188_v63, %v2699_v20  ;;  %v2756_v40 = vsel %vm370_vm2, %v169_v6, %v187_v44  ;;  %v2760_v43 = vsel %vm370_vm2, %v187_v44, %v169_v6  ;;  %v2775_v6 = vadd.f32 %v289_v42, %v61_v5  ;;  %v1915_v16 = vpop.f32.mrf.mxu1 }
  0xea   :  { %3587 = vst [vmem:[#allocation29_spill] sm:$0xff] %v2756_v40  ;;  %3588 = vst [vmem:[#allocation30_spill] sm:$0xff] %v2760_v43  ;;  %v192_v3 = vpop.f32.mrf.mxu0  ;;  %v2777_v44 = vadd.f32 %v269_v0, %v61_v5  ;;  %v2802_v63 = vadd.f32 %v1915_v16, %v61_v5  ;;  %v157_v0 = vadd.f32 %v2693_v4, %v2697_v14 }
  0xeb   :  { %3585 = vst [vmem:[#allocation27_spill] sm:$0xff] %v2750_v62  ;;  %v193_v47 = vadd.f32 %v192_v3, %v2697_v14  ;;  %3591 = vst [vmem:[#allocation31_spill] sm:$0xff] %v2775_v6  ;;  %v299_v39 = vpop.f32.mrf.mxu1 }
  0xec   :  { %3592 = vst [vmem:[#allocation32_spill] sm:$0xff] %v2777_v44  ;;  %v194_v59 = vpop.f32.mrf.mxu0  ;;  %3594 = vst [vmem:[#allocation34_spill] sm:$0xff] %v2802_v63  ;;  %v2823_v4 = vadd.f32 %v299_v39, %v61_v5 }
  0xed   :  { %v2788_v43 = vadd.f32 %v194_v59, %v2699_v20  ;;  %v2800_v3 = vsel %vm370_vm2, %v163_v22, %v193_v47  ;;  %v2806_v59 = vsel %vm370_vm2, %v193_v47, %v163_v22 }
  0xee   :  { %v198_v27 = vpop.f32.mrf.mxu0  ;;  %3595 = vst [vmem:[#allocation35_spill] sm:$0xff] %v2806_v59  ;;  %3596 = vst [vmem:[#allocation36_spill] sm:$0xff] %v2823_v4 }
  0xef   :  { %3593 = vst [vmem:[#allocation33_spill] sm:$0xff] %v2788_v43  ;;  %v199_v60 = vadd.f32 %v198_v27, %v2697_v14  ;;  %v2827_v14 = vadd.f32 %v2695_v10, %v2699_v20 }
  0xf0   :  { %v200_v6 = vpop.f32.mrf.mxu0 }
  0xf1   :  { %3597 = vst [vmem:[#allocation37_spill] sm:$0xff] %v2827_v14  ;;  %v2830_v27 = vadd.f32 %v200_v6, %v2699_v20  ;;  %v379_v47 = vsel %vm370_vm2, %v157_v0, %v199_v60  ;;  %v2836_v16 = vsel %vm370_vm2, %v199_v60, %v157_v0 }
  0xf2   :  { %3599 = vst [vmem:[#allocation39_spill] sm:$0xff] %v2836_v16  ;;  %v448_v42 = vpop.f32.mrf.mxu0 }
  0xf3   :  { %3598 = vst [vmem:[#allocation38_spill] sm:$0xff] %v2830_v27  ;;  %v523_v20 = vadd.f32 %v448_v42, %v379_v47  ;;  %v380_v60 = vsel %vm2721_vm3, %v2827_v14, %v2830_v27  ;;  %v2857_v47 = vld [vmem:[%s3488_s4] ss:$0 sm:$0xff] }
  0xf4   :  { %v450_v6 = vpop.f32.mrf.mxu0 }
  0xf5   :  { %v1738_v32 = vmul.f32 -1.442695, %v523_v20  ;;  %v524_v0 = vadd.f32 %v450_v6, %v380_v60 }
  0xf7   :  { %2201 = vpow2.f32 %v1738_v32  ;;  %v1739_v22 = vmul.f32 -1.442695, %v524_v0 }
  0xf9   :  { %2203 = vpow2.f32 %v1739_v22  ;;  %v381_v22 = vsel %vm2762_vm4, %v2777_v44, %v2802_v63 }
 0x104   :  { %v2202_v39 = vpop.eup %2201 }
 0x105   :  { %v531_v16 = vadd.f32 1.0, %v2202_v39 }
 0x106   :  { %v2204_v42 = vpop.eup %2203 }
 0x107   :  { %2205 = vrcp.f32 %v531_v16  ;;  %v532_v5 = vadd.f32 1.0, %v2204_v42  ;;  %v3606_v42 = vld [vmem:[#allocation14_spill] sm:$0xff] }
 0x109   :  { %2207 = vrcp.f32 %v532_v5  ;;  %v3605_v5 = vld [vmem:[#allocation8_spill] sm:$0xff] }
 0x10e   :  { %v519_v20 = vpop.f32.mrf.mxu1 }
 0x10f   :  { %v537_v10 = vadd.f32 %v2857_v47, %v519_v20  ;;  %v3607_v20 = vld [vmem:[#allocation9_spill] sm:$0xff] }
 0x110   :  { %v1950_v59 = vpop.f32.mrf.mxu1 }
 0x111   :  { %v3601_v59 = vmov 0.0  }
 0x114   :  { %v2206_v14 = vpop.eup %2205 }
 0x115   :  { %v538_v32 = vmul.f32 %v2206_v14, %v537_v10  ;;  %v3602_v14 = vld [vmem:[#allocation6_spill] sm:$0xff]  ;;  %v3604_v10 = vld [vmem:[#allocation7_spill] sm:$0xff] }
 0x116   :  { %v2208_v39 = vpop.eup %2207 }
 0x117   :  { %v539_v16 = vadd.f32 %v538_v32, %v381_v22  ;;  %v541_v60 = vsub.f32 1.0, %v2208_v39  ;;  %v543_v27 = vmul.f32 0.0, %v2208_v39  ;;  %v3608_v32 = vld [vmem:[#allocation10_spill] sm:$0xff]  ;;  %v3609_v22 = vld [vmem:[#allocation15_spill] sm:$0xff]  ;;  %v3611_v39 = vld [vmem:[#allocation12_spill] sm:$0xff] }
 0x119   :  { %2209 = vtanh.f32 %v539_v16  ;;  %v3610_v16 = vld [vmem:[#allocation11_spill] sm:$0xff] }
 0x126   :  { %v2210_v6 = vpop.eup %2209 }
 0x127   :  { %v542_v0 = vmul.f32 %v2210_v6, %v541_v60  ;;  %v3612_v60 = vld [vmem:[#allocation16_spill] sm:$0xff]  ;;  %v3613_v6 = vld [vmem:[#allocation5_spill] sm:$0xff] }
 0x129   :  { %v2864_v61 = vadd.f32 %v543_v27, %v542_v0  ;;  %v3603_v27 = vld [vmem:[#allocation13_spill] sm:$0xff] }
 0x12b   :  { %3600 = vst [vmem:[#allocation40_spill] sm:$0xff] %v2864_v61  ;;  %614 = vmatmul.mubr.f32.vlgmr.msra.gmra.mxu0 %v2864_v61  ;;  %1984 = vmatmul.mubr.f32.vlgmr.msra.gmra.mxu1 %v2864_v61 }
 0x12c   :  { %717 = vmatpush1.msra.mxu0 %v2409_v7  ;;  %1987 = vmatpush3.msra.mxu1 %v2546_v46 }
 0x12d   :  { %718 = vmatprep.subr.mxu0 %v2411_v8  ;;  %1988 = vmatprep.subr.mxu1 %v3601_v59 }
 0x12e   :  { %719 = vmatpush1.msra.mxu0 %v2415_v9  ;;  %1989 = vmatpush3.msra.mxu1 %v2554_v48 }
 0x12f   :  { %720 = vmatprep.subr.mxu0 %v2422_v11  ;;  %1990 = vmatprep.subr.mxu1 %v3601_v59 }
 0x130   :  { %721 = vmatpush1.msra.mxu0 %v2425_v12  ;;  %1991 = vmatpush3.msra.mxu1 %v2560_v49 }
 0x131   :  { %722 = vmatprep.subr.mxu0 %v2428_v13  ;;  %1992 = vmatprep.subr.mxu1 %v3601_v59 }
 0x132   :  { %723 = vmatpush1.msra.mxu0 %v2435_v15  ;;  %1993 = vmatpush3.msra.mxu1 %v2565_v50 }
 0x133   :  { %724 = vmatprep.subr.mxu0 %v2442_v17  ;;  %1994 = vmatprep.subr.mxu1 %v3601_v59 }
 0x134   :  { %725 = vmatpush1.msra.mxu0 %v2445_v18  ;;  %1995 = vmatpush3.msra.mxu1 %v2572_v51 }
 0x135   :  { %726 = vmatprep.subr.mxu0 %v2448_v19  ;;  %1996 = vmatprep.subr.mxu1 %v3601_v59 }
 0x136   :  { %727 = vmatpush1.msra.mxu0 %v2455_v21  ;;  %1997 = vmatpush3.msra.mxu1 %v2578_v52 }
 0x137   :  { %728 = vmatprep.subr.mxu0 %v2462_v23  ;;  %1998 = vmatprep.subr.mxu1 %v3601_v59 }
 0x138   :  { %729 = vmatpush1.msra.mxu0 %v2465_v24  ;;  %1999 = vmatpush3.msra.mxu1 %v2584_v53 }
 0x139   :  { %730 = vmatprep.subr.mxu0 %v2468_v25  ;;  %2000 = vmatprep.subr.mxu1 %v3601_v59 }
 0x13a   :  { %731 = vmatpush1.msra.mxu0 %v2472_v26  ;;  %2001 = vmatpush3.msra.mxu1 %v2590_v54 }
 0x13b   :  { %732 = vmatprep.subr.mxu0 %v2479_v28  ;;  %2002 = vmatprep.subr.mxu1 %v3601_v59 }
 0x13c   :  { %733 = vmatpush1.msra.mxu0 %v2482_v29  ;;  %2003 = vmatpush3.msra.mxu1 %v2596_v55 }
 0x13d   :  { %734 = vmatprep.subr.mxu0 %v2486_v30  ;;  %2004 = vmatprep.subr.mxu1 %v3601_v59 }
 0x13e   :  { %735 = vmatpush1.msra.mxu0 %v2491_v31  ;;  %2005 = vmatpush3.msra.mxu1 %v2602_v56 }
 0x13f   :  { %736 = vmatprep.subr.mxu0 %v2498_v33  ;;  %2006 = vmatprep.subr.mxu1 %v3601_v59 }
 0x140   :  { %737 = vmatpush1.msra.mxu0 %v2501_v34  ;;  %2007 = vmatpush3.msra.mxu1 %v2608_v57 }
 0x141   :  { %738 = vmatprep.subr.mxu0 %v2505_v35  ;;  %2008 = vmatprep.subr.mxu1 %v3601_v59 }
 0x142   :  { %739 = vmatpush1.msra.mxu0 %v2510_v36  ;;  %2009 = vmatpush3.msra.mxu1 %v2614_v58 }
 0x143   :  { %740 = vmatprep.subr.mxu0 %v2517_v38  ;;  %2010 = vmatprep.subr.mxu1 %v3601_v59 }
 0x144   :  { %741 = vmatpush1.msra.mxu0 %v3602_v14  ;;  %2011 = vmatpush3.msra.mxu1 %v3603_v27 }
 0x145   :  { %742 = vmatprep.subr.mxu0 %v3604_v10  ;;  %2012 = vmatprep.subr.mxu1 %v3601_v59 }
 0x146   :  { %743 = vmatpush1.msra.mxu0 %v3605_v5  ;;  %2013 = vmatpush3.msra.mxu1 %v3606_v42 }
 0x147   :  { %744 = vmatprep.subr.mxu0 %v3607_v20  ;;  %2014 = vmatprep.subr.mxu1 %v3601_v59 }
 0x148   :  { %745 = vmatpush1.msra.mxu0 %v3608_v32  ;;  %2015 = vmatpush3.msra.mxu1 %v3609_v22 }
 0x149   :  { %746 = vmatprep.subr.mxu0 %v3610_v16  ;;  %2016 = vmatprep.subr.mxu1 %v3601_v59 }
 0x14a   :  { %747 = vmatpush1.msra.mxu0 %v3611_v39  ;;  %780 = vmatprep.mubr.f32.mxu0 %v3601_v59 }
 0x14b   :  { %2017 = vmatpush3.msra.mxu1 %v3612_v60  ;;  %2018 = vmatprep.mubr.msk.f32.mxu1 %vm2356_vm1, %v3601_v59  ;;  %v3614_v60 = vsel %vm2721_vm3, %v2705_v37, %v2788_v43  ;;  %v3649_v43 = vld [vmem:[#allocation25_spill] sm:$0xff] }
 0x14c   :  { %883 = vmatprep.subr.mxu0 %v3613_v6  ;;  %2021 = vmatprep.subr.mxu1 %v3601_v59 }
 0x1eb   :  { %v615_v0 = vpop.f32.mrf.mxu0  ;;  %v686_v44 = vpop.f32.mrf.mxu1 }
 0x1ec   :  { %v690_v63 = vadd.f32 %v615_v0, %v2800_v3  ;;  %v704_v42 = vadd.f32 %v2857_v47, %v686_v44  ;;  %v3626_v44 = vld [vmem:[#allocation18_spill] sm:$0xff] }
 0x1ed   :  { %v1985_v62 = vpop.f32.mrf.mxu1  ;;  %v617_v40 = vpop.f32.mrf.mxu0 }
 0x1ee   :  { %v1740_v2 = vmul.f32 -1.442695, %v690_v63  ;;  %v691_v39 = vadd.f32 %v617_v40, %v3614_v60 }
 0x1f0   :  { %2211 = vpow2.f32 %v1740_v2  ;;  %v1741_v16 = vmul.f32 -1.442695, %v691_v39  ;;  %v3615_v2 = vsel %vm2762_vm4, %v2716_v1, %v2823_v4  ;;  %v3276_v1 = vld [vmem:[#allocation2 + $0x10] sm:$0xff] }
 0x1f2   :  { %2213 = vpow2.f32 %v1741_v16 }
 0x1fd   :  { %v2212_v22 = vpop.eup %2211 }
 0x1fe   :  { %v698_v6 = vadd.f32 1.0, %v2212_v22 }
 0x1ff   :  { %v2214_v32 = vpop.eup %2213 }
 0x200   :  { %2215 = vrcp.f32 %v698_v6  ;;  %v699_v20 = vadd.f32 1.0, %v2214_v32 }
 0x202   :  { %2217 = vrcp.f32 %v699_v20 }
 0x20d   :  { %v2216_v3 = vpop.eup %2215 }
 0x20e   :  { %v705_v62 = vmul.f32 %v2216_v3, %v704_v42  ;;  %v3627_v42 = vld [vmem:[#allocation27_spill] sm:$0xff] }
 0x20f   :  { %v2218_v40 = vpop.eup %2217  ;;  %v3628_v20 = vsel %vm2721_vm3, %v3626_v44, %v3627_v42 }
 0x210   :  { %v706_v63 = vadd.f32 %v705_v62, %v3615_v2  ;;  %v708_v39 = vsub.f32 1.0, %v2218_v40  ;;  %v710_v22 = vmul.f32 %v2218_v40, %v2864_v61  ;;  %v3272_v61 = vld [vmem:[#allocation2] sm:$0xff] }
 0x212   :  { %2219 = vtanh.f32 %v706_v63 }
 0x21f   :  { %v2220_v16 = vpop.eup %2219 }
 0x220   :  { %v709_v60 = vmul.f32 %v2220_v16, %v708_v39 }
 0x222   :  { %v2948_v6 = vadd.f32 %v710_v22, %v709_v60  ;;  %v3629_v60 = vld [vmem:[#allocation26_spill] sm:$0xff]  ;;  %v3630_v22 = vld [vmem:[#allocation28_spill] sm:$0xff] }
 0x224   :  { %3616 = vst [vmem:[#allocation6_spill] sm:$0xff] %v2948_v6  ;;  %781 = vmatmul.mubr.f32.vlgmr.msra.gmra.mxu0 %v2948_v6  ;;  %2019 = vmatmul.mubr.f32.vlgmr.msra.gmra.mxu1 %v2948_v6 }
 0x225   :  { %884 = vmatpush1.msra.mxu0 %v2409_v7  ;;  %2022 = vmatpush3.msra.mxu1 %v2546_v46  ;;  %v3617_v7 = vld [vmem:[#allocation14_spill] sm:$0xff] }
 0x226   :  { %885 = vmatprep.subr.mxu0 %v2411_v8  ;;  %2023 = vmatprep.subr.mxu1 %v3601_v59  ;;  %v3618_v8 = vld [vmem:[#allocation9_spill] sm:$0xff] }
 0x227   :  { %886 = vmatpush1.msra.mxu0 %v2415_v9  ;;  %2024 = vmatpush3.msra.mxu1 %v2554_v48  ;;  %v3619_v9 = vld [vmem:[#allocation10_spill] sm:$0xff] }
 0x228   :  { %887 = vmatprep.subr.mxu0 %v2422_v11  ;;  %2025 = vmatprep.subr.mxu1 %v3601_v59  ;;  %v3620_v11 = vld [vmem:[#allocation15_spill] sm:$0xff] }
 0x229   :  { %888 = vmatpush1.msra.mxu0 %v2425_v12  ;;  %2026 = vmatpush3.msra.mxu1 %v2560_v49  ;;  %v3621_v12 = vld [vmem:[#allocation11_spill] sm:$0xff] }
 0x22a   :  { %889 = vmatprep.subr.mxu0 %v2428_v13  ;;  %2027 = vmatprep.subr.mxu1 %v3601_v59  ;;  %v3622_v13 = vld [vmem:[#allocation12_spill] sm:$0xff] }
 0x22b   :  { %890 = vmatpush1.msra.mxu0 %v2435_v15  ;;  %2028 = vmatpush3.msra.mxu1 %v2565_v50  ;;  %v3623_v15 = vld [vmem:[#allocation16_spill] sm:$0xff]  ;;  %3647 = vst [vmem:[#allocation12_spill] sm:$0xff] %v3272_v61 }
 0x22c   :  { %891 = vmatprep.subr.mxu0 %v2442_v17  ;;  %2029 = vmatprep.subr.mxu1 %v3601_v59  ;;  %v3624_v17 = vld [vmem:[#allocation5_spill] sm:$0xff]  ;;  %3648 = vst [vmem:[#allocation16_spill] sm:$0xff] %v3276_v1 }
 0x22d   :  { %892 = vmatpush1.msra.mxu0 %v2445_v18  ;;  %2030 = vmatpush3.msra.mxu1 %v2572_v51 }
 0x22e   :  { %893 = vmatprep.subr.mxu0 %v2448_v19  ;;  %2031 = vmatprep.subr.mxu1 %v3601_v59 }
 0x22f   :  { %894 = vmatpush1.msra.mxu0 %v2455_v21  ;;  %2032 = vmatpush3.msra.mxu1 %v2578_v52  ;;  %v3625_v21 = vld [vmem:[#allocation29_spill] sm:$0xff] }
 0x230   :  { %895 = vmatprep.subr.mxu0 %v2462_v23  ;;  %2033 = vmatprep.subr.mxu1 %v3601_v59 }
 0x231   :  { %896 = vmatpush1.msra.mxu0 %v2465_v24  ;;  %2034 = vmatpush3.msra.mxu1 %v2584_v53 }
 0x232   :  { %897 = vmatprep.subr.mxu0 %v2468_v25  ;;  %2035 = vmatprep.subr.mxu1 %v3601_v59 }
 0x233   :  { %898 = vmatpush1.msra.mxu0 %v2472_v26  ;;  %2036 = vmatpush3.msra.mxu1 %v2590_v54 }
 0x234   :  { %899 = vmatprep.subr.mxu0 %v2479_v28  ;;  %2037 = vmatprep.subr.mxu1 %v3601_v59 }
 0x235   :  { %900 = vmatpush1.msra.mxu0 %v2482_v29  ;;  %2038 = vmatpush3.msra.mxu1 %v2596_v55 }
 0x236   :  { %901 = vmatprep.subr.mxu0 %v2486_v30  ;;  %2039 = vmatprep.subr.mxu1 %v3601_v59 }
 0x237   :  { %902 = vmatpush1.msra.mxu0 %v2491_v31  ;;  %2040 = vmatpush3.msra.mxu1 %v2602_v56 }
 0x238   :  { %903 = vmatprep.subr.mxu0 %v2498_v33  ;;  %2041 = vmatprep.subr.mxu1 %v3601_v59 }
 0x239   :  { %904 = vmatpush1.msra.mxu0 %v2501_v34  ;;  %2042 = vmatpush3.msra.mxu1 %v2608_v57 }
 0x23a   :  { %905 = vmatprep.subr.mxu0 %v2505_v35  ;;  %2043 = vmatprep.subr.mxu1 %v3601_v59 }
 0x23b   :  { %906 = vmatpush1.msra.mxu0 %v2510_v36  ;;  %2044 = vmatpush3.msra.mxu1 %v2614_v58 }
 0x23c   :  { %907 = vmatprep.subr.mxu0 %v2517_v38  ;;  %2045 = vmatprep.subr.mxu1 %v3601_v59 }
 0x23d   :  { %908 = vmatpush1.msra.mxu0 %v3602_v14  ;;  %2046 = vmatpush3.msra.mxu1 %v3603_v27 }
 0x23e   :  { %909 = vmatprep.subr.mxu0 %v3604_v10  ;;  %2047 = vmatprep.subr.mxu1 %v3601_v59 }
 0x23f   :  { %910 = vmatpush1.msra.mxu0 %v3605_v5  ;;  %2048 = vmatpush3.msra.mxu1 %v3617_v7 }
 0x240   :  { %911 = vmatprep.subr.mxu0 %v3618_v8  ;;  %2049 = vmatprep.subr.mxu1 %v3601_v59 }
 0x241   :  { %912 = vmatpush1.msra.mxu0 %v3619_v9  ;;  %2050 = vmatpush3.msra.mxu1 %v3620_v11 }
 0x242   :  { %913 = vmatprep.subr.mxu0 %v3621_v12  ;;  %2051 = vmatprep.subr.mxu1 %v3601_v59 }
 0x243   :  { %914 = vmatpush1.msra.mxu0 %v3622_v13  ;;  %947 = vmatprep.mubr.f32.mxu0 %v3601_v59 }
 0x244   :  { %2052 = vmatpush3.msra.mxu1 %v3623_v15  ;;  %2053 = vmatprep.mubr.msk.f32.mxu1 %vm2356_vm1, %v3601_v59 }
 0x245   :  { %1050 = vmatprep.subr.mxu0 %v3624_v17  ;;  %2056 = vmatprep.subr.mxu1 %v3601_v59  ;;  %v3631_v17 = vsel %vm2762_vm4, %v3629_v60, %v3630_v22 }
 0x2e4   :  { %v782_v18 = vpop.f32.mrf.mxu0  ;;  %v853_v19 = vpop.f32.mrf.mxu1 }
 0x2e5   :  { %v857_v23 = vadd.f32 %v782_v18, %v3625_v21  ;;  %v871_v40 = vadd.f32 %v2857_v47, %v853_v19  ;;  %v3036_v19 = vld [vmem:[#allocation2 + $0x168] sm:$0xff] }
 0x2e6   :  { %v2020_v24 = vpop.f32.mrf.mxu1  ;;  %v784_v26 = vpop.f32.mrf.mxu0 }
 0x2e7   :  { %v1742_v25 = vmul.f32 -1.442695, %v857_v23  ;;  %v858_v32 = vadd.f32 %v784_v26, %v3628_v20 }
 0x2e9   :  { %2221 = vpow2.f32 %v1742_v25  ;;  %v1743_v0 = vmul.f32 -1.442695, %v858_v32  ;;  %v3040_v32 = vld [vmem:[#allocation2 + $0x158] sm:$0xff] }
 0x2eb   :  { %2223 = vpow2.f32 %v1743_v0  ;;  %v3044_v0 = vld [vmem:[#allocation2 + $0x150] sm:$0xff] }
 0x2f6   :  { %v2222_v3 = vpop.eup %2221 }
 0x2f7   :  { %v865_v62 = vadd.f32 1.0, %v2222_v3  ;;  %v3048_v3 = vld [vmem:[#allocation2 + $0x140] sm:$0xff] }
 0x2f8   :  { %v2224_v2 = vpop.eup %2223 }
 0x2f9   :  { %2225 = vrcp.f32 %v865_v62  ;;  %v866_v63 = vadd.f32 1.0, %v2224_v2  ;;  %v3052_v62 = vld [vmem:[#allocation2 + $0x138] sm:$0xff]  ;;  %v3060_v2 = vld [vmem:[#allocation2 + $0x120] sm:$0xff] }
 0x2fb   :  { %2227 = vrcp.f32 %v866_v63  ;;  %v3068_v63 = vld [vmem:[#allocation2 + $0x108] sm:$0xff] }
 0x306   :  { %v2226_v39 = vpop.eup %2225 }
 0x307   :  { %v872_v16 = vmul.f32 %v2226_v39, %v871_v40  ;;  %v3076_v40 = vld [vmem:[#allocation2 + $0xf0] sm:$0xff]  ;;  %v3084_v39 = vld [vmem:[#allocation2 + $0xd8] sm:$0xff] }
 0x308   :  { %v2228_v21 = vpop.eup %2227 }
 0x309   :  { %v873_v18 = vadd.f32 %v872_v16, %v3631_v17  ;;  %v875_v23 = vsub.f32 1.0, %v2228_v21  ;;  %v877_v26 = vmul.f32 %v2228_v21, %v2948_v6  ;;  %v3092_v16 = vld [vmem:[#allocation2 + $0xc0] sm:$0xff]  ;;  %v3268_v6 = vld [vmem:[#allocation2 + $0x8] sm:$0xff] }
 0x30a   :  { %3646 = vst [vmem:[#allocation11_spill] sm:$0xff] %v3268_v6 }
 0x30b   :  { %2229 = vtanh.f32 %v873_v18 }
 0x318   :  { %v2230_v24 = vpop.eup %2229 }
 0x319   :  { %v876_v25 = vmul.f32 %v2230_v24, %v875_v23  ;;  %v3153_v23 = vld [vmem:[#allocation2 + $0x178] sm:$0xff]  ;;  %v3159_v24 = vld [vmem:[#allocation2 + $0x160] sm:$0xff] }
 0x31b   :  { %v3032_v20 = vadd.f32 %v877_v26, %v876_v25  ;;  %v3165_v25 = vld [vmem:[#allocation2 + $0x148] sm:$0xff]  ;;  %v3171_v26 = vld [vmem:[#allocation2 + $0x130] sm:$0xff] }
 0x31d   :  { %3632 = vst [vmem:[#allocation13_spill] sm:$0xff] %v3032_v20  ;;  %948 = vmatmul.mubr.f32.vlgmr.msra.gmra.mxu0 %v3032_v20  ;;  %2054 = vmatmul.mubr.f32.vlgmr.msra.gmra.mxu1 %v3032_v20 }
 0x31e   :  { %1051 = vmatpush1.msra.mxu0 %v3036_v19  ;;  %2057 = vmatpush3.msra.mxu1 %v2546_v46  ;;  %v3056_v46 = vld [vmem:[#allocation2 + $0x128] sm:$0xff] }
 0x31f   :  { %1052 = vmatprep.subr.mxu0 %v3040_v32  ;;  %2058 = vmatprep.subr.mxu1 %v3601_v59 }
 0x320   :  { %1053 = vmatpush1.msra.mxu0 %v3044_v0  ;;  %2059 = vmatpush3.msra.mxu1 %v2554_v48  ;;  %v3064_v48 = vld [vmem:[#allocation2 + $0x110] sm:$0xff] }
 0x321   :  { %1054 = vmatprep.subr.mxu0 %v3048_v3  ;;  %2060 = vmatprep.subr.mxu1 %v3601_v59 }
 0x322   :  { %1055 = vmatpush1.msra.mxu0 %v3052_v62  ;;  %2061 = vmatpush3.msra.mxu1 %v2560_v49  ;;  %v3072_v49 = vld [vmem:[#allocation2 + $0xf8] sm:$0xff] }
 0x323   :  { %1056 = vmatprep.subr.mxu0 %v3056_v46  ;;  %2062 = vmatprep.subr.mxu1 %v3601_v59 }
 0x324   :  { %1057 = vmatpush1.msra.mxu0 %v3060_v2  ;;  %2063 = vmatpush3.msra.mxu1 %v2565_v50  ;;  %v3080_v50 = vld [vmem:[#allocation2 + $0xe0] sm:$0xff] }
 0x325   :  { %1058 = vmatprep.subr.mxu0 %v3064_v48  ;;  %2064 = vmatprep.subr.mxu1 %v3601_v59 }
 0x326   :  { %1059 = vmatpush1.msra.mxu0 %v3068_v63  ;;  %2065 = vmatpush3.msra.mxu1 %v2572_v51  ;;  %v3088_v51 = vld [vmem:[#allocation2 + $0xc8] sm:$0xff] }
 0x327   :  { %1060 = vmatprep.subr.mxu0 %v3072_v49  ;;  %2066 = vmatprep.subr.mxu1 %v3601_v59 }
 0x328   :  { %1061 = vmatpush1.msra.mxu0 %v3076_v40  ;;  %2067 = vmatpush3.msra.mxu1 %v2578_v52  ;;  %v3636_v52 = vld [vmem:[#allocation22_spill] sm:$0xff] }
 0x329   :  { %1062 = vmatprep.subr.mxu0 %v3080_v50  ;;  %2068 = vmatprep.subr.mxu1 %v3601_v59 }
 0x32a   :  { %1063 = vmatpush1.msra.mxu0 %v3084_v39  ;;  %2069 = vmatpush3.msra.mxu1 %v2584_v53 }
 0x32b   :  { %1064 = vmatprep.subr.mxu0 %v3088_v51  ;;  %2070 = vmatprep.subr.mxu1 %v3601_v59 }
 0x32c   :  { %1065 = vmatpush1.msra.mxu0 %v3092_v16  ;;  %2071 = vmatpush3.msra.mxu1 %v2590_v54 }
 0x32d   :  { %1066 = vmatprep.subr.mxu0 %v2479_v28  ;;  %2072 = vmatprep.subr.mxu1 %v3601_v59  ;;  %v3131_v28 = vld [vmem:[#allocation2 + $0x170] sm:$0xff] }
 0x32e   :  { %1067 = vmatpush1.msra.mxu0 %v2482_v29  ;;  %2073 = vmatpush3.msra.mxu1 %v2596_v55  ;;  %3633 = vst [vmem:[#allocation7_spill] sm:$0xff] %v3131_v28 }
 0x32f   :  { %1068 = vmatprep.subr.mxu0 %v2486_v30  ;;  %2074 = vmatprep.subr.mxu1 %v3601_v59 }
 0x330   :  { %1069 = vmatpush1.msra.mxu0 %v2491_v31  ;;  %2075 = vmatpush3.msra.mxu1 %v2602_v56  ;;  %v3634_v31 = vld [vmem:[#allocation24_spill] sm:$0xff] }
 0x331   :  { %1070 = vmatprep.subr.mxu0 %v2498_v33  ;;  %2076 = vmatprep.subr.mxu1 %v3601_v59 }
 0x332   :  { %1071 = vmatpush1.msra.mxu0 %v2501_v34  ;;  %2077 = vmatpush3.msra.mxu1 %v2608_v57 }
 0x333   :  { %1072 = vmatprep.subr.mxu0 %v2505_v35  ;;  %2078 = vmatprep.subr.mxu1 %v3601_v59 }
 0x334   :  { %1073 = vmatpush1.msra.mxu0 %v2510_v36  ;;  %2079 = vmatpush3.msra.mxu1 %v2614_v58 }
 0x335   :  { %1074 = vmatprep.subr.mxu0 %v2517_v38  ;;  %2080 = vmatprep.subr.mxu1 %v3601_v59  ;;  %v3635_v38 = vld [vmem:[#allocation19_spill] sm:$0xff] }
 0x336   :  { %1075 = vmatpush1.msra.mxu0 %v3602_v14  ;;  %2081 = vmatpush3.msra.mxu1 %v3603_v27  ;;  %v3637_v53 = vsel %vm2721_vm3, %v3635_v38, %v3636_v52 }
 0x337   :  { %1076 = vmatprep.subr.mxu0 %v3604_v10  ;;  %2082 = vmatprep.subr.mxu1 %v3601_v59 }
 0x338   :  { %1077 = vmatpush1.msra.mxu0 %v3605_v5  ;;  %2083 = vmatpush3.msra.mxu1 %v3617_v7  ;;  %v3638_v7 = vld [vmem:[#allocation23_spill] sm:$0xff] }
 0x339   :  { %1078 = vmatprep.subr.mxu0 %v3618_v8  ;;  %2084 = vmatprep.subr.mxu1 %v3601_v59  ;;  %v3639_v8 = vld [vmem:[#allocation31_spill] sm:$0xff] }
 0x33a   :  { %1079 = vmatpush1.msra.mxu0 %v3619_v9  ;;  %2085 = vmatpush3.msra.mxu1 %v3620_v11  ;;  %v3640_v9 = vsel %vm2762_vm4, %v3638_v7, %v3639_v8 }
 0x33b   :  { %1080 = vmatprep.subr.mxu0 %v3621_v12  ;;  %2086 = vmatprep.subr.mxu1 %v3601_v59 }
 0x33c   :  { %1081 = vmatpush1.msra.mxu0 %v3622_v13  ;;  %1114 = vmatprep.mubr.f32.mxu0 %v3601_v59 }
 0x33d   :  { %2087 = vmatpush3.msra.mxu1 %v3623_v15  ;;  %2088 = vmatprep.mubr.msk.f32.mxu1 %vm2356_vm1, %v3601_v59 }
 0x33e   :  { %1217 = vmatprep.subr.mxu0 %v3131_v28  ;;  %2091 = vmatprep.subr.mxu1 %v3601_v59 }
 0x3dd   :  { %v949_v29 = vpop.f32.mrf.mxu0  ;;  %v1020_v30 = vpop.f32.mrf.mxu1 }
 0x3de   :  { %v1024_v33 = vadd.f32 %v949_v29, %v3634_v31  ;;  %v1038_v27 = vadd.f32 %v2857_v47, %v1020_v30  ;;  %v3177_v29 = vld [vmem:[#allocation2 + $0x118] sm:$0xff]  ;;  %v3183_v30 = vld [vmem:[#allocation2 + $0x100] sm:$0xff]  ;;  %v3189_v31 = vld [vmem:[#allocation2 + $0xe8] sm:$0xff] }
 0x3df   :  { %v2055_v34 = vpop.f32.mrf.mxu1  ;;  %v951_v36 = vpop.f32.mrf.mxu0 }
 0x3e0   :  { %v1744_v35 = vmul.f32 -1.442695, %v1024_v33  ;;  %v1025_v54 = vadd.f32 %v951_v36, %v3637_v53  ;;  %v3195_v33 = vld [vmem:[#allocation2 + $0xd0] sm:$0xff]  ;;  %v3205_v36 = vld [vmem:[#allocation2 + $0xb8] sm:$0xff] }
 0x3e1   :  { %v3198_v34 = vld [vmem:[#allocation2 + $0xb0] sm:$0xff]  ;;  %v3208_v53 = vld [vmem:[#allocation2 + $0x98] sm:$0xff] }
 0x3e2   :  { %2231 = vpow2.f32 %v1744_v35  ;;  %v1745_v55 = vmul.f32 -1.442695, %v1025_v54  ;;  %v3202_v35 = vld [vmem:[#allocation2 + $0xa8] sm:$0xff]  ;;  %v3212_v54 = vld [vmem:[#allocation2 + $0x90] sm:$0xff] }
 0x3e4   :  { %2233 = vpow2.f32 %v1745_v55  ;;  %v3215_v55 = vld [vmem:[#allocation2 + $0xa0] sm:$0xff] }
 0x3ef   :  { %v2232_v56 = vpop.eup %2231 }
 0x3f0   :  { %v1032_v57 = vadd.f32 1.0, %v2232_v56  ;;  %v3218_v56 = vld [vmem:[#allocation2 + $0x80] sm:$0xff] }
 0x3f1   :  { %v2234_v58 = vpop.eup %2233 }
 0x3f2   :  { %2235 = vrcp.f32 %v1032_v57  ;;  %v1033_v14 = vadd.f32 1.0, %v2234_v58  ;;  %v3222_v57 = vld [vmem:[#allocation2 + $0x78] sm:$0xff]  ;;  %v3225_v58 = vld [vmem:[#allocation2 + $0x88] sm:$0xff] }
 0x3f4   :  { %2237 = vrcp.f32 %v1033_v14  ;;  %v3228_v14 = vld [vmem:[#allocation2 + $0x68] sm:$0xff] }
 0x3ff   :  { %v2236_v10 = vpop.eup %2235 }
 0x400   :  { %v1039_v5 = vmul.f32 %v2236_v10, %v1038_v27  ;;  %v3232_v27 = vld [vmem:[#allocation2 + $0x60] sm:$0xff]  ;;  %v3235_v10 = vld [vmem:[#allocation2 + $0x70] sm:$0xff] }
 0x401   :  { %v2238_v12 = vpop.eup %2237 }
 0x402   :  { %v1040_v11 = vadd.f32 %v1039_v5, %v3640_v9  ;;  %v1042_v13 = vsub.f32 1.0, %v2238_v12  ;;  %v1044_v18 = vmul.f32 %v2238_v12, %v3032_v20  ;;  %v3238_v5 = vld [vmem:[#allocation2 + $0x50] sm:$0xff]  ;;  %v3242_v9 = vld [vmem:[#allocation2 + $0x48] sm:$0xff]  ;;  %v3248_v12 = vld [vmem:[#allocation2 + $0x38] sm:$0xff] }
 0x403   :  { %v3265_v20 = vld [vmem:[#allocation2 + $0x28] sm:$0xff] }
 0x404   :  { %2239 = vtanh.f32 %v1040_v11  ;;  %v3245_v11 = vld [vmem:[#allocation2 + $0x58] sm:$0xff]  ;;  %3645 = vst [vmem:[#allocation15_spill] sm:$0xff] %v3265_v20 }
 0x411   :  { %v2240_v15 = vpop.eup %2239 }
 0x412   :  { %v1043_v17 = vmul.f32 %v2240_v15, %v1042_v13  ;;  %v3252_v13 = vld [vmem:[#allocation2 + $0x30] sm:$0xff]  ;;  %v3255_v15 = vld [vmem:[#allocation2 + $0x40] sm:$0xff] }
 0x413   :  { %3642 = vst [vmem:[#allocation14_spill] sm:$0xff] %v3255_v15 }
 0x414   :  { %v3148_v21 = vadd.f32 %v1044_v18, %v1043_v17  ;;  %v3258_v17 = vld [vmem:[#allocation2 + $0x20] sm:$0xff]  ;;  %v3262_v18 = vld [vmem:[#allocation2 + $0x18] sm:$0xff] }
 0x415   :  { %3643 = vst [vmem:[#allocation9_spill] sm:$0xff] %v3258_v17  ;;  %3644 = vst [vmem:[#allocation10_spill] sm:$0xff] %v3262_v18 }
 0x416   :  { %3641 = vst [vmem:[#allocation8_spill] sm:$0xff] %v3148_v21  ;;  %1115 = vmatmul.mubr.f32.vlgmr.msra.gmra.mxu0 %v3148_v21  ;;  %2089 = vmatmul.mubr.f32.vlgmr.msra.gmra.mxu1 %v3148_v21 }
 0x417   :  { %1218 = vmatpush1.msra.mxu0 %v3036_v19  ;;  %2092 = vmatpush3.msra.mxu1 %v3153_v23 }
 0x418   :  { %1219 = vmatprep.subr.mxu0 %v3040_v32  ;;  %2093 = vmatprep.subr.mxu1 %v3601_v59 }
 0x419   :  { %1220 = vmatpush1.msra.mxu0 %v3044_v0  ;;  %2094 = vmatpush3.msra.mxu1 %v3159_v24 }
 0x41a   :  { %1221 = vmatprep.subr.mxu0 %v3048_v3  ;;  %2095 = vmatprep.subr.mxu1 %v3601_v59 }
 0x41b   :  { %1222 = vmatpush1.msra.mxu0 %v3052_v62  ;;  %2096 = vmatpush3.msra.mxu1 %v3165_v25 }
 0x41c   :  { %1223 = vmatprep.subr.mxu0 %v3056_v46  ;;  %2097 = vmatprep.subr.mxu1 %v3601_v59 }
 0x41d   :  { %1224 = vmatpush1.msra.mxu0 %v3060_v2  ;;  %2098 = vmatpush3.msra.mxu1 %v3171_v26 }
 0x41e   :  { %1225 = vmatprep.subr.mxu0 %v3064_v48  ;;  %2099 = vmatprep.subr.mxu1 %v3601_v59 }
 0x41f   :  { %1226 = vmatpush1.msra.mxu0 %v3068_v63  ;;  %2100 = vmatpush3.msra.mxu1 %v3177_v29 }
 0x420   :  { %1227 = vmatprep.subr.mxu0 %v3072_v49  ;;  %2101 = vmatprep.subr.mxu1 %v3601_v59 }
 0x421   :  { %1228 = vmatpush1.msra.mxu0 %v3076_v40  ;;  %2102 = vmatpush3.msra.mxu1 %v3183_v30 }
 0x422   :  { %1229 = vmatprep.subr.mxu0 %v3080_v50  ;;  %2103 = vmatprep.subr.mxu1 %v3601_v59 }
 0x423   :  { %1230 = vmatpush1.msra.mxu0 %v3084_v39  ;;  %2104 = vmatpush3.msra.mxu1 %v3189_v31 }
 0x424   :  { %1231 = vmatprep.subr.mxu0 %v3088_v51  ;;  %2105 = vmatprep.subr.mxu1 %v3601_v59 }
 0x425   :  { %1232 = vmatpush1.msra.mxu0 %v3092_v16  ;;  %2106 = vmatpush3.msra.mxu1 %v3195_v33 }
 0x426   :  { %1233 = vmatprep.subr.mxu0 %v3198_v34  ;;  %2107 = vmatprep.subr.mxu1 %v3601_v59 }
 0x427   :  { %1234 = vmatpush1.msra.mxu0 %v3202_v35  ;;  %2108 = vmatpush3.msra.mxu1 %v3205_v36 }
 0x428   :  { %1235 = vmatprep.subr.mxu0 %v3208_v53  ;;  %2109 = vmatprep.subr.mxu1 %v3601_v59 }
 0x429   :  { %1236 = vmatpush1.msra.mxu0 %v3212_v54  ;;  %2110 = vmatpush3.msra.mxu1 %v3215_v55 }
 0x42a   :  { %1237 = vmatprep.subr.mxu0 %v3218_v56  ;;  %2111 = vmatprep.subr.mxu1 %v3601_v59 }
 0x42b   :  { %1238 = vmatpush1.msra.mxu0 %v3222_v57  ;;  %2112 = vmatpush3.msra.mxu1 %v3225_v58 }
 0x42c   :  { %1239 = vmatprep.subr.mxu0 %v3228_v14  ;;  %2113 = vmatprep.subr.mxu1 %v3601_v59 }
 0x42d   :  { %1240 = vmatpush1.msra.mxu0 %v3232_v27  ;;  %2114 = vmatpush3.msra.mxu1 %v3235_v10 }
 0x42e   :  { %1241 = vmatprep.subr.mxu0 %v3238_v5  ;;  %2115 = vmatprep.subr.mxu1 %v3601_v59 }
 0x42f   :  { %1242 = vmatpush1.msra.mxu0 %v3242_v9  ;;  %2116 = vmatpush3.msra.mxu1 %v3245_v11 }
 0x430   :  { %1243 = vmatprep.subr.mxu0 %v3248_v12  ;;  %2117 = vmatprep.subr.mxu1 %v3601_v59 }
 0x431   :  { %1244 = vmatpush1.msra.mxu0 %v3252_v13  ;;  %2118 = vmatpush3.msra.mxu1 %v3255_v15 }
 0x432   :  { %1245 = vmatprep.subr.mxu0 %v3258_v17  ;;  %2119 = vmatprep.subr.mxu1 %v3601_v59 }
 0x433   :  { %1246 = vmatpush1.msra.mxu0 %v3262_v18  ;;  %2120 = vmatpush3.msra.mxu1 %v3265_v20 }
 0x434   :  { %1247 = vmatprep.subr.mxu0 %v3268_v6  ;;  %2121 = vmatprep.subr.mxu1 %v3601_v59 }
 0x435   :  { %1248 = vmatpush1.msra.mxu0 %v3272_v61  ;;  %1281 = vmatprep.mubr.f32.mxu0 %v3601_v59 }
 0x436   :  { %2122 = vmatpush3.msra.mxu1 %v3276_v1  ;;  %2123 = vmatprep.mubr.msk.f32.mxu1 %vm2356_vm1, %v3601_v59  ;;  %v3650_v1 = vsel %vm2721_vm3, %v3636_v52, %v3635_v38  ;;  %v3654_v38 = vld [vmem:[#allocation10_spill] sm:$0xff]  ;;  %v3655_v52 = vld [vmem:[#allocation15_spill] sm:$0xff] }
 0x437   :  { %1384 = vmatprep.subr.mxu0 %v3131_v28  ;;  %2126 = vmatprep.subr.mxu1 %v3601_v59 }
 0x4d6   :  { %v1116_v4 = vpop.f32.mrf.mxu0  ;;  %v1187_v37 = vpop.f32.mrf.mxu1 }
 0x4d7   :  { %v1191_v60 = vadd.f32 %v1116_v4, %v3649_v43  ;;  %v1205_v15 = vadd.f32 %v2857_v47, %v1187_v37  ;;  %v3652_v37 = vld [vmem:[#allocation14_spill] sm:$0xff] }
 0x4d8   :  { %v2090_v22 = vpop.f32.mrf.mxu1  ;;  %v1118_v42 = vpop.f32.mrf.mxu0 }
 0x4d9   :  { %v1746_v44 = vmul.f32 -1.442695, %v1191_v60  ;;  %v1192_v61 = vadd.f32 %v1118_v42, %v3650_v1 }
 0x4db   :  { %2241 = vpow2.f32 %v1746_v44  ;;  %v1747_v6 = vmul.f32 -1.442695, %v1192_v61  ;;  %v3651_v44 = vsel %vm2762_vm4, %v3639_v8, %v3638_v7  ;;  %v3656_v7 = vld [vmem:[#allocation11_spill] sm:$0xff]  ;;  %v3657_v8 = vld [vmem:[#allocation12_spill] sm:$0xff] }
 0x4dd   :  { %2243 = vpow2.f32 %v1747_v6 }
 0x4e8   :  { %v2242_v20 = vpop.eup %2241 }
 0x4e9   :  { %v1199_v28 = vadd.f32 1.0, %v2242_v20 }
 0x4ea   :  { %v2244_v18 = vpop.eup %2243 }
 0x4eb   :  { %2245 = vrcp.f32 %v1199_v28  ;;  %v1200_v17 = vadd.f32 1.0, %v2244_v18  ;;  %v3653_v28 = vld [vmem:[#allocation9_spill] sm:$0xff] }
 0x4ed   :  { %2247 = vrcp.f32 %v1200_v17  ;;  %v3659_v17 = vld [vmem:[#allocation7_spill] sm:$0xff] }
 0x4f8   :  { %v2246_v43 = vpop.eup %2245 }
 0x4f9   :  { %v1206_v4 = vmul.f32 %v2246_v43, %v1205_v15  ;;  %v3658_v15 = vld [vmem:[#allocation16_spill] sm:$0xff] }
 0x4fa   :  { %v2248_v1 = vpop.eup %2247 }
 0x4fb   :  { %v1207_v60 = vadd.f32 %v1206_v4, %v3651_v44  ;;  %v1209_v61 = vsub.f32 1.0, %v2248_v1  ;;  %v1211_v22 = vmul.f32 %v2248_v1, %v3148_v21  ;;  %v3660_v4 = vld [vmem:[#allocation30_spill] sm:$0xff] }
 0x4fd   :  { %2249 = vtanh.f32 %v1207_v60 }
 0x50a   :  { %v2250_v6 = vpop.eup %2249 }
 0x50b   :  { %v1210_v42 = vmul.f32 %v2250_v6, %v1209_v61  ;;  %v3661_v6 = vld [vmem:[#allocation27_spill] sm:$0xff] }
 0x50d   :  { %v3296_v20 = vadd.f32 %v1211_v22, %v1210_v42  ;;  %v3662_v42 = vld [vmem:[#allocation18_spill] sm:$0xff] }
 0x50e   :  { %v3663_v22 = vsel %vm2721_vm3, %v3661_v6, %v3662_v42 }
 0x50f   :  { %1282 = vmatmul.mubr.f32.vlgmr.msra.gmra.mxu0 %v3296_v20  ;;  %2124 = vmatmul.mubr.f32.vlgmr.msra.gmra.mxu1 %v3296_v20 }
 0x510   :  { %1385 = vmatpush1.msra.mxu0 %v3036_v19  ;;  %2127 = vmatpush3.msra.mxu1 %v3153_v23 }
 0x511   :  { %1386 = vmatprep.subr.mxu0 %v3040_v32  ;;  %2128 = vmatprep.subr.mxu1 %v3601_v59 }
 0x512   :  { %1387 = vmatpush1.msra.mxu0 %v3044_v0  ;;  %2129 = vmatpush3.msra.mxu1 %v3159_v24 }
 0x513   :  { %1388 = vmatprep.subr.mxu0 %v3048_v3  ;;  %2130 = vmatprep.subr.mxu1 %v3601_v59 }
 0x514   :  { %1389 = vmatpush1.msra.mxu0 %v3052_v62  ;;  %2131 = vmatpush3.msra.mxu1 %v3165_v25 }
 0x515   :  { %1390 = vmatprep.subr.mxu0 %v3056_v46  ;;  %2132 = vmatprep.subr.mxu1 %v3601_v59 }
 0x516   :  { %1391 = vmatpush1.msra.mxu0 %v3060_v2  ;;  %2133 = vmatpush3.msra.mxu1 %v3171_v26 }
 0x517   :  { %1392 = vmatprep.subr.mxu0 %v3064_v48  ;;  %2134 = vmatprep.subr.mxu1 %v3601_v59 }
 0x518   :  { %1393 = vmatpush1.msra.mxu0 %v3068_v63  ;;  %2135 = vmatpush3.msra.mxu1 %v3177_v29 }
 0x519   :  { %1394 = vmatprep.subr.mxu0 %v3072_v49  ;;  %2136 = vmatprep.subr.mxu1 %v3601_v59 }
 0x51a   :  { %1395 = vmatpush1.msra.mxu0 %v3076_v40  ;;  %2137 = vmatpush3.msra.mxu1 %v3183_v30 }
 0x51b   :  { %1396 = vmatprep.subr.mxu0 %v3080_v50  ;;  %2138 = vmatprep.subr.mxu1 %v3601_v59 }
 0x51c   :  { %1397 = vmatpush1.msra.mxu0 %v3084_v39  ;;  %2139 = vmatpush3.msra.mxu1 %v3189_v31 }
 0x51d   :  { %1398 = vmatprep.subr.mxu0 %v3088_v51  ;;  %2140 = vmatprep.subr.mxu1 %v3601_v59 }
 0x51e   :  { %1399 = vmatpush1.msra.mxu0 %v3092_v16  ;;  %2141 = vmatpush3.msra.mxu1 %v3195_v33 }
 0x51f   :  { %1400 = vmatprep.subr.mxu0 %v3198_v34  ;;  %2142 = vmatprep.subr.mxu1 %v3601_v59 }
 0x520   :  { %1401 = vmatpush1.msra.mxu0 %v3202_v35  ;;  %2143 = vmatpush3.msra.mxu1 %v3205_v36 }
 0x521   :  { %1402 = vmatprep.subr.mxu0 %v3208_v53  ;;  %2144 = vmatprep.subr.mxu1 %v3601_v59 }
 0x522   :  { %1403 = vmatpush1.msra.mxu0 %v3212_v54  ;;  %2145 = vmatpush3.msra.mxu1 %v3215_v55 }
 0x523   :  { %1404 = vmatprep.subr.mxu0 %v3218_v56  ;;  %2146 = vmatprep.subr.mxu1 %v3601_v59 }
 0x524   :  { %1405 = vmatpush1.msra.mxu0 %v3222_v57  ;;  %2147 = vmatpush3.msra.mxu1 %v3225_v58 }
 0x525   :  { %1406 = vmatprep.subr.mxu0 %v3228_v14  ;;  %2148 = vmatprep.subr.mxu1 %v3601_v59 }
 0x526   :  { %1407 = vmatpush1.msra.mxu0 %v3232_v27  ;;  %2149 = vmatpush3.msra.mxu1 %v3235_v10 }
 0x527   :  { %1408 = vmatprep.subr.mxu0 %v3238_v5  ;;  %2150 = vmatprep.subr.mxu1 %v3601_v59 }
 0x528   :  { %1409 = vmatpush1.msra.mxu0 %v3242_v9  ;;  %2151 = vmatpush3.msra.mxu1 %v3245_v11 }
 0x529   :  { %1410 = vmatprep.subr.mxu0 %v3248_v12  ;;  %2152 = vmatprep.subr.mxu1 %v3601_v59 }
 0x52a   :  { %1411 = vmatpush1.msra.mxu0 %v3252_v13  ;;  %2153 = vmatpush3.msra.mxu1 %v3652_v37 }
 0x52b   :  { %1412 = vmatprep.subr.mxu0 %v3653_v28  ;;  %2154 = vmatprep.subr.mxu1 %v3601_v59 }
 0x52c   :  { %1413 = vmatpush1.msra.mxu0 %v3654_v38  ;;  %2155 = vmatpush3.msra.mxu1 %v3655_v52 }
 0x52d   :  { %1414 = vmatprep.subr.mxu0 %v3656_v7  ;;  %2156 = vmatprep.subr.mxu1 %v3601_v59 }
 0x52e   :  { %1415 = vmatpush1.msra.mxu0 %v3657_v8  ;;  %1448 = vmatprep.mubr.f32.mxu0 %v3601_v59 }
 0x52f   :  { %2157 = vmatpush3.msra.mxu1 %v3658_v15  ;;  %2158 = vmatprep.mubr.msk.f32.mxu1 %vm2356_vm1, %v3601_v59 }
 0x530   :  { %1551 = vmatprep.subr.mxu0 %v3659_v17  ;;  %2161 = vmatprep.subr.mxu1 %v3601_v59 }
 0x5cf   :  { %v1283_v18 = vpop.f32.mrf.mxu0  ;;  %v1354_v43 = vpop.f32.mrf.mxu1 }
 0x5d0   :  { %v1358_v44 = vadd.f32 %v1283_v18, %v3660_v4  ;;  %v1372_v38 = vadd.f32 %v2857_v47, %v1354_v43  ;;  %v3668_v47 = vld [vmem:[#allocation15_spill] sm:$0xff] }
 0x5d1   :  { %v2125_v60 = vpop.f32.mrf.mxu1  ;;  %v1285_v61 = vpop.f32.mrf.mxu0 }
 0x5d2   :  { %v1748_v1 = vmul.f32 -1.442695, %v1358_v44  ;;  %v1359_v21 = vadd.f32 %v1285_v61, %v3663_v22  ;;  %v3664_v44 = vld [vmem:[#allocation28_spill] sm:$0xff]  ;;  %v3665_v60 = vld [vmem:[#allocation26_spill] sm:$0xff] }
 0x5d4   :  { %2251 = vpow2.f32 %v1748_v1  ;;  %v1749_v15 = vmul.f32 -1.442695, %v1359_v21  ;;  %v3666_v1 = vsel %vm2762_vm4, %v3664_v44, %v3665_v60 }
 0x5d6   :  { %2253 = vpow2.f32 %v1749_v15 }
 0x5e1   :  { %v2252_v8 = vpop.eup %2251 }
 0x5e2   :  { %v1366_v17 = vadd.f32 1.0, %v2252_v8 }
 0x5e3   :  { %v2254_v7 = vpop.eup %2253 }
 0x5e4   :  { %2255 = vrcp.f32 %v1366_v17  ;;  %v1367_v52 = vadd.f32 1.0, %v2254_v7 }
 0x5e6   :  { %2257 = vrcp.f32 %v1367_v52 }
 0x5f1   :  { %v2256_v18 = vpop.eup %2255 }
 0x5f2   :  { %v1373_v4 = vmul.f32 %v2256_v18, %v1372_v38 }
 0x5f3   :  { %v2258_v61 = vpop.eup %2257 }
 0x5f4   :  { %v1374_v45 = vadd.f32 %v1373_v4, %v3666_v1  ;;  %v1376_v21 = vsub.f32 1.0, %v2258_v61  ;;  %v1378_v8 = vmul.f32 %v2258_v61, %v3296_v20  ;;  %v3684_v1 = vld [vmem:[#allocation34_spill] sm:$0xff]  ;;  %v3685_v61 = vld [vmem:[#allocation32_spill] sm:$0xff] }
 0x5f6   :  { %2259 = vtanh.f32 %v1374_v45  ;;  %v3667_v45 = vld [vmem:[#allocation10_spill] sm:$0xff] }
 0x603   :  { %v2260_v15 = vpop.eup %2259 }
 0x604   :  { %v1377_v6 = vmul.f32 %v2260_v15, %v1376_v21  ;;  %v3686_v21 = vsel %vm2762_vm4, %v3684_v1, %v3685_v61 }
 0x606   :  { %v3380_v42 = vadd.f32 %v1378_v8, %v1377_v6  ;;  %v3687_v6 = vld [vmem:[#allocation40_spill] sm:$0xff]  ;;  %v3688_v8 = vld [vmem:[#allocation6_spill] sm:$0xff] }
 0x608   :  { %1449 = vmatmul.mubr.f32.vlgmr.msra.gmra.mxu0 %v3380_v42  ;;  %2159 = vmatmul.mubr.f32.vlgmr.msra.gmra.mxu1 %v3380_v42 }
 0x609   :  { %1552 = vmatpush1.msra.mxu0 %v3036_v19  ;;  %2162 = vmatpush3.msra.mxu1 %v3153_v23  ;;  %v3669_v19 = vld [vmem:[#allocation11_spill] sm:$0xff] }
 0x60a   :  { %1553 = vmatprep.subr.mxu0 %v3040_v32  ;;  %2163 = vmatprep.subr.mxu1 %v3601_v59  ;;  %v3670_v32 = vld [vmem:[#allocation12_spill] sm:$0xff] }
 0x60b   :  { %1554 = vmatpush1.msra.mxu0 %v3044_v0  ;;  %2164 = vmatpush3.msra.mxu1 %v3159_v24  ;;  %v3671_v0 = vld [vmem:[#allocation16_spill] sm:$0xff] }
 0x60c   :  { %1555 = vmatprep.subr.mxu0 %v3048_v3  ;;  %2165 = vmatprep.subr.mxu1 %v3601_v59 }
 0x60d   :  { %1556 = vmatpush1.msra.mxu0 %v3052_v62  ;;  %2166 = vmatpush3.msra.mxu1 %v3165_v25 }
 0x60e   :  { %1557 = vmatprep.subr.mxu0 %v3056_v46  ;;  %2167 = vmatprep.subr.mxu1 %v3601_v59  ;;  %v3672_v46 = vld [vmem:[#allocation35_spill] sm:$0xff] }
 0x60f   :  { %1558 = vmatpush1.msra.mxu0 %v3060_v2  ;;  %2168 = vmatpush3.msra.mxu1 %v3171_v26 }
 0x610   :  { %1559 = vmatprep.subr.mxu0 %v3064_v48  ;;  %2169 = vmatprep.subr.mxu1 %v3601_v59 }
 0x611   :  { %1560 = vmatpush1.msra.mxu0 %v3068_v63  ;;  %2170 = vmatpush3.msra.mxu1 %v3177_v29  ;;  %v2329_v29 = vld [vmem:[%s3488_s4] ss:$0 sm:$0xff] }
 0x612   :  { %1561 = vmatprep.subr.mxu0 %v3072_v49  ;;  %2171 = vmatprep.subr.mxu1 %v3601_v59 }
 0x613   :  { %1562 = vmatpush1.msra.mxu0 %v3076_v40  ;;  %2172 = vmatpush3.msra.mxu1 %v3183_v30 }
 0x614   :  { %1563 = vmatprep.subr.mxu0 %v3080_v50  ;;  %2173 = vmatprep.subr.mxu1 %v3601_v59  ;;  %v3674_v50 = vld [vmem:[#allocation33_spill] sm:$0xff] }
 0x615   :  { %1564 = vmatpush1.msra.mxu0 %v3084_v39  ;;  %2174 = vmatpush3.msra.mxu1 %v3189_v31  ;;  %v3675_v39 = vld [vmem:[#allocation17_spill] sm:$0xff] }
 0x616   :  { %1565 = vmatprep.subr.mxu0 %v3088_v51  ;;  %2175 = vmatprep.subr.mxu1 %v3601_v59  ;;  %v3676_v51 = vsel %vm2721_vm3, %v3674_v50, %v3675_v39 }
 0x617   :  { %1566 = vmatpush1.msra.mxu0 %v3092_v16  ;;  %2176 = vmatpush3.msra.mxu1 %v3195_v33 }
 0x618   :  { %1567 = vmatprep.subr.mxu0 %v3198_v34  ;;  %2177 = vmatprep.subr.mxu1 %v3601_v59  ;;  %v3677_v34 = vld [vmem:[#allocation36_spill] sm:$0xff] }
 0x619   :  { %1568 = vmatpush1.msra.mxu0 %v3202_v35  ;;  %2178 = vmatpush3.msra.mxu1 %v3205_v36  ;;  %v3678_v35 = vld [vmem:[#allocation20_spill] sm:$0xff] }
 0x61a   :  { %1569 = vmatprep.subr.mxu0 %v3208_v53  ;;  %2179 = vmatprep.subr.mxu1 %v3601_v59  ;;  %v3679_v36 = vsel %vm2762_vm4, %v3677_v34, %v3678_v35 }
 0x61b   :  { %1570 = vmatpush1.msra.mxu0 %v3212_v54  ;;  %2180 = vmatpush3.msra.mxu1 %v3215_v55 }
 0x61c   :  { %1571 = vmatprep.subr.mxu0 %v3218_v56  ;;  %2181 = vmatprep.subr.mxu1 %v3601_v59 }
 0x61d   :  { %1572 = vmatpush1.msra.mxu0 %v3222_v57  ;;  %2182 = vmatpush3.msra.mxu1 %v3225_v58 }
 0x61e   :  { %1573 = vmatprep.subr.mxu0 %v3228_v14  ;;  %2183 = vmatprep.subr.mxu1 %v3601_v59 }
 0x61f   :  { %1574 = vmatpush1.msra.mxu0 %v3232_v27  ;;  %2184 = vmatpush3.msra.mxu1 %v3235_v10 }
 0x620   :  { %1575 = vmatprep.subr.mxu0 %v3238_v5  ;;  %2185 = vmatprep.subr.mxu1 %v3601_v59  ;;  %v3680_v5 = vld [vmem:[#allocation39_spill] sm:$0xff] }
 0x621   :  { %1576 = vmatpush1.msra.mxu0 %v3242_v9  ;;  %2186 = vmatpush3.msra.mxu1 %v3245_v11 }
 0x622   :  { %1577 = vmatprep.subr.mxu0 %v3248_v12  ;;  %2187 = vmatprep.subr.mxu1 %v3601_v59 }
 0x623   :  { %1578 = vmatpush1.msra.mxu0 %v3252_v13  ;;  %2188 = vmatpush3.msra.mxu1 %v3652_v37  ;;  %v3681_v37 = vld [vmem:[#allocation38_spill] sm:$0xff] }
 0x624   :  { %1579 = vmatprep.subr.mxu0 %v3653_v28  ;;  %2189 = vmatprep.subr.mxu1 %v3601_v59  ;;  %v3682_v28 = vld [vmem:[#allocation37_spill] sm:$0xff] }
 0x625   :  { %1580 = vmatpush1.msra.mxu0 %v3667_v45  ;;  %2190 = vmatpush3.msra.mxu1 %v3668_v47  ;;  %v3683_v38 = vsel %vm2721_vm3, %v3681_v37, %v3682_v28  ;;  %v712_v45 = vadd.f32 %v3688_v8, %v3687_v6  ;;  %v3689_v47 = vld [vmem:[#allocation13_spill] sm:$0xff] }
 0x626   :  { %1581 = vmatprep.subr.mxu0 %v3669_v19  ;;  %2191 = vmatprep.subr.mxu1 %v3601_v59 }
 0x627   :  { %1582 = vmatpush1.msra.mxu0 %v3670_v32  ;;  %1615 = vmatprep.mubr.f32.mxu0 %v3601_v59  ;;  %v879_v19 = vadd.f32 %v3689_v47, %v712_v45 }
 0x628   :  { %2192 = vmatpush3.msra.mxu1 %v3671_v0  ;;  %2193 = vmatprep.mubr.msk.f32.mxu1 %vm2356_vm1, %v3601_v59  ;;  %v3690_v0 = vld [vmem:[#allocation8_spill] sm:$0xff] }
 0x6c8   :  { %v1450_v3 = vpop.f32.mrf.mxu0  ;;  %v1521_v62 = vpop.f32.mrf.mxu1 }
 0x6c9   :  { %v1525_v2 = vadd.f32 %v1450_v3, %v3672_v46  ;;  %v1539_v30 = vadd.f32 %v2329_v29, %v1521_v62  ;;  %v1046_v3 = vadd.f32 %v3690_v0, %v879_v19 }
 0x6ca   :  { %v2160_v48 = vpop.f32.mrf.mxu1  ;;  %v1452_v49 = vpop.f32.mrf.mxu0 }
 0x6cb   :  { %v1750_v63 = vmul.f32 -1.442695, %v1525_v2  ;;  %v1526_v16 = vadd.f32 %v1452_v49, %v3676_v51  ;;  %v1213_v62 = vadd.f32 %v3296_v20, %v1046_v3 }
 0x6cd   :  { %2261 = vpow2.f32 %v1750_v63  ;;  %v1751_v23 = vmul.f32 -1.442695, %v1526_v16  ;;  %v1380_v48 = vadd.f32 %v3380_v42, %v1213_v62 }
 0x6cf   :  { %2263 = vpow2.f32 %v1751_v23 }
 0x6da   :  { %v2262_v24 = vpop.eup %2261 }
 0x6db   :  { %v1533_v25 = vadd.f32 1.0, %v2262_v24 }
 0x6dc   :  { %v2264_v59 = vpop.eup %2263 }
 0x6dd   :  { %2265 = vrcp.f32 %v1533_v25  ;;  %v1534_v26 = vadd.f32 1.0, %v2264_v59 }
 0x6df   :  { %2267 = vrcp.f32 %v1534_v26 }
 0x6ea   :  { %v2266_v31 = vpop.eup %2265 }
 0x6eb   :  { %v1540_v33 = vmul.f32 %v2266_v31, %v1539_v30 }
 0x6ec   :  { %v2268_v54 = vpop.eup %2267 }
 0x6ed   :  { %v1541_v53 = vadd.f32 %v1540_v33, %v3679_v36  ;;  %v1543_v55 = vsub.f32 1.0, %v2268_v54  ;;  %v1545_v58 = vmul.f32 %v2268_v54, %v3380_v42 }
 0x6ef   :  { %2269 = vtanh.f32 %v1541_v53 }
 0x6fc   :  { %v2270_v56 = vpop.eup %2269 }
 0x6fd   :  { %v1544_v57 = vmul.f32 %v2270_v56, %v1543_v55 }
 0x6ff   :  { %v1546_v14 = vadd.f32 %v1545_v58, %v1544_v57 }
 0x701   :  { %1616 = vmatmul.mubr.f32.vlgmr.msra.gmra.mxu0 %v1546_v14  ;;  %2194 = vmatmul.mubr.f32.vlgmr.msra.gmra.mxu1 %v1546_v14  ;;  %v1547_v49 = vadd.f32 %v1546_v14, %v1380_v48 }
 0x7c1   :  { %v1617_v27 = vpop.f32.mrf.mxu0  ;;  %v1688_v10 = vpop.f32.mrf.mxu1 }
 0x7c2   :  { %v1692_v9 = vadd.f32 %v1617_v27, %v3680_v5  ;;  %v1706_v4 = vadd.f32 %v2329_v29, %v1688_v10 }
 0x7c3   :  { %v2195_v11 = vpop.f32.mrf.mxu1  ;;  %v1619_v13 = vpop.f32.mrf.mxu0 }
 0x7c4   :  { %v1752_v12 = vmul.f32 -1.442695, %v1692_v9  ;;  %v1693_v52 = vadd.f32 %v1619_v13, %v3683_v38 }
 0x7c6   :  { %2271 = vpow2.f32 %v1752_v12  ;;  %v1753_v7 = vmul.f32 -1.442695, %v1693_v52 }
 0x7c8   :  { %2273 = vpow2.f32 %v1753_v7 }
 0x7d3   :  { %v2272_v43 = vpop.eup %2271 }
 0x7d4   :  { %v1700_v22 = vadd.f32 1.0, %v2272_v43 }
 0x7d5   :  { %v2274_v17 = vpop.eup %2273 }
 0x7d6   :  { %2275 = vrcp.f32 %v1700_v22  ;;  %v1701_v18 = vadd.f32 1.0, %v2274_v17 }
 0x7d8   :  { %2277 = vrcp.f32 %v1701_v18 }
 0x7e3   :  { %v2276_v44 = vpop.eup %2275 }
 0x7e4   :  { %v1707_v60 = vmul.f32 %v2276_v44, %v1706_v4 }
 0x7e5   :  { %v2278_v32 = vpop.eup %2277 }
 0x7e6   :  { %v1708_v15 = vadd.f32 %v1707_v60, %v3686_v21  ;;  %v1710_v46 = vsub.f32 1.0, %v2278_v32  ;;  %v1712_v63 = vmul.f32 %v2278_v32, %v1546_v14 }
 0x7e8   :  { %2279 = vtanh.f32 %v1708_v15 }
 0x7f5   :  { %v2280_v2 = vpop.eup %2279 }
 0x7f6   :  { %v1711_v41 = vmul.f32 %v2280_v2, %v1710_v46 }
 0x7f8   :  { %v1713_v40 = vadd.f32 %v1712_v63, %v1711_v41 }
 0x7fa   :  { %v1714_v50 = vadd.f32 %v1713_v40, %v1547_v49 }
 0x7fc   :  { %1715 = vst [vmem:[%s3489_s5] sm:$0xff] %v1714_v50 }
 0x7fd   :  { %1720 = vsyncpa [#allocation3], 1 }

</bundles_post_ra>
